<compile_context>
chip_gen: v7x
topology: tpu7x:2x2x1
jax: 0.10.0
libtpu: 0.0.40
codegen_flags: <defaults>
</compile_context>

<pallas_src>
import functools

import jax
import jax.numpy as jnp
from jax.experimental import pallas as pl
from jax.experimental.pallas import tpu as pltpu


_LN_EPS = 1e-12

# Row layout of the packed (24, H) f32 parameter block.
_ROW_W_POS0 = 0      # rows 0..6 : pos_linear.weight.T  (7, H)
_ROW_W_ZERO = 7      # zeros: absorbs the mask column in the MXU pos path
_ROW_MASK_PROJ = 8   # mask_embedding[1] @ img_linear.weight.T
_ROW_B_IMG = 9
_ROW_G_IMG = 10
_ROW_BE_IMG = 11
_ROW_B_POS = 12
_ROW_G_POS = 13
_ROW_BE_POS = 14
_ROW_G_OUT = 15
_ROW_BE_OUT = 16
_VEC_ROWS = 24       # padded to a multiple of 8 sublanes


def _round_up(x, m):
    return (x + m - 1) // m * m


def _chip_tuning():
    """Per-generation defaults: row tile, scoped-VMEM limit, grid clamp, pos path."""
    try:
        kind = jax.devices()[0].device_kind.lower()
    except Exception:  # pragma: no cover - defensive
        kind = ""
    if "7x" in kind or "v7" in kind:
        # v7x: 64 MiB VMEM/TC, 2 TCs -> smaller tiles, >=4 grid steps, VALU-tight.
        return dict(row_tile=512, vmem_limit_bytes=48 * 1024 * 1024,
                    min_grid_steps=4, pos_on_mxu=True)
    if "v6" in kind or "6e" in kind:
        # v6e: 128 MiB VMEM, HBM-bound -> big tiles; MXU has slack for the K=7 op.
        return dict(row_tile=1024, vmem_limit_bytes=64 * 1024 * 1024,
                    min_grid_steps=2, pos_on_mxu=True)
    if "v5" in kind:
        # v5e: MXU-bound -> keep the K=7 linear on the VPU, big tiles.
        return dict(row_tile=1024, vmem_limit_bytes=64 * 1024 * 1024,
                    min_grid_steps=2, pos_on_mxu=False)
    return dict(row_tile=512, vmem_limit_bytes=32 * 1024 * 1024,
                min_grid_steps=2, pos_on_mxu=False)


def _layer_norm(x, gamma, beta, eps=_LN_EPS):
    # One-pass statistics (E[x^2] - E[x]^2): one fewer elementwise pass than the
    # centered two-pass form.  All f32; variance clamped at 0 for safety.
    mu = jnp.mean(x, axis=-1, keepdims=True)
    ms = jnp.mean(x * x, axis=-1, keepdims=True)
    var = jnp.maximum(ms - mu * mu, 0.0)
    return (x - mu) * jax.lax.rsqrt(var + eps) * gamma + beta


def _row(vecs_ref, r):
    # Static sublane slice -> (1, H), broadcast against (TN, H).
    return vecs_ref[r:r + 1, :]


def uniter_img_emb_kernel(feat_ref, posmask_ref, type_ref, w_img_ref, vecs_ref,
                          out_ref, *, pos_on_mxu):
    f32 = jnp.float32
    pm = posmask_ref[...]                                   # (TN, 8) f32

    # --- image branch: bf16 MXU operands, f32 accumulation.  The mask-embedding
    # add is folded through the weight: (feat + m*emb1) @ W = feat@W + m*(emb1@W).
    im = jnp.dot(feat_ref[...], w_img_ref[...], preferred_element_type=f32)
    mask = pm[:, 7:8]                                       # (TN, 1) in {0, 1}
    im = im + mask * _row(vecs_ref, _ROW_MASK_PROJ) + _row(vecs_ref, _ROW_B_IMG)
    im = _layer_norm(im, _row(vecs_ref, _ROW_G_IMG), _row(vecs_ref, _ROW_BE_IMG))

    # --- position branch (K=7).
    if pos_on_mxu:
        # (TN, 8) @ (8, H) on the MXU; weight row 7 is zero so the mask column
        # contributes nothing.  bf16 operands, f32 accumulation.
        pdt = w_img_ref.dtype
        w_pos8 = vecs_ref[_ROW_W_POS0:_ROW_W_POS0 + 8, :].astype(pdt)
        pos = jnp.dot(pm.astype(pdt), w_pos8, preferred_element_type=f32)
    else:
        # 7 broadcast FMAs on the VPU (free filler under the img matmul on v5e).
        pos = pm[:, 0:1] * _row(vecs_ref, _ROW_W_POS0)
        for k in range(1, 7):                               # static, unrolled
            pos = pos + pm[:, k:k + 1] * _row(vecs_ref, _ROW_W_POS0 + k)
    pos = pos + _row(vecs_ref, _ROW_B_POS)
    pos = _layer_norm(pos, _row(vecs_ref, _ROW_G_POS), _row(vecs_ref, _ROW_BE_POS))

    # --- combine + final LayerNorm
    emb = im + pos + type_ref[...].astype(f32)
    out = _layer_norm(emb, _row(vecs_ref, _ROW_G_OUT), _row(vecs_ref, _ROW_BE_OUT))
    out_ref[...] = out.astype(out_ref.dtype)
    # TODO(synk): dropout is identity in eval mode; training-mode dropout not implemented.


def uniter_image_embeddings(img_feat, img_pos_feat, type_embeddings, img_masks,
                            params, *, row_tile=None, vmem_limit_bytes=None,
                            min_grid_steps=None, pos_on_mxu=None,
                            compute_dtype=jnp.bfloat16, out_dtype=None,
                            interpret=False):
    tune = _chip_tuning()
    row_tile = tune["row_tile"] if row_tile is None else row_tile
    vmem_limit_bytes = (tune["vmem_limit_bytes"] if vmem_limit_bytes is None
                        else vmem_limit_bytes)
    min_grid_steps = tune["min_grid_steps"] if min_grid_steps is None else min_grid_steps
    pos_on_mxu = tune["pos_on_mxu"] if pos_on_mxu is None else pos_on_mxu
    out_dtype = type_embeddings.dtype if out_dtype is None else out_dtype

    B, L, img_dim = img_feat.shape
    H = type_embeddings.shape[-1]
    N = B * L
    f32 = jnp.float32

    # Row tile: multiple of 8, clamped so the grid has >= min_grid_steps when
    # possible.  Ragged N is handled by Pallas partial edge blocks (cdiv grid) —
    # no wrapper-side jnp.pad copies of the big activations.
    req = _round_up(max(int(row_tile), 8), 8)
    cap = max(8, _round_up(pl.cdiv(N, min_grid_steps), 8))
    row_tile = min(req, cap)
    grid = (pl.cdiv(N, row_tile),)

    # Inputs (reshape only; no full-array pads).  In production, produce
    # type_embeddings in bf16 upstream so this cast fuses away.
    x_feat = img_feat.reshape(N, img_dim).astype(compute_dtype)
    x_type = type_embeddings.reshape(N, H).astype(compute_dtype)
    pos_cols = img_pos_feat.reshape(N, 7).astype(f32)
    if img_masks is None:
        mask_col = jnp.zeros((N, 1), f32)
    else:
        mask_col = img_masks.reshape(N, 1).astype(f32)
    x_posmask = jnp.concatenate([pos_cols, mask_col], axis=1)          # (N, 8)

    w_img = params["img_linear_wT"].astype(compute_dtype)              # (img_dim, H)

    # mask_embedding folded through img_linear (row 0 is padding_idx -> zeros).
    mask_proj = jnp.dot(params["mask_embedding"][1].astype(f32),
                        params["img_linear_wT"].astype(f32))           # (H,)

    # Pack pos weight + mask projection + biases + LN params into one (24, H) block.
    vecs = jnp.zeros((_VEC_ROWS, H), f32)
    vecs = vecs.at[_ROW_W_POS0:_ROW_W_POS0 + 7].set(
        params["pos_linear_wT"].astype(f32))
    # _ROW_W_ZERO stays zero (absorbs the mask column on the MXU pos path).
    vecs = vecs.at[_ROW_MASK_PROJ].set(mask_proj)
    vecs = vecs.at[_ROW_B_IMG].set(params["img_linear_b"].astype(f32))
    vecs = vecs.at[_ROW_G_IMG].set(params["img_ln_g"].astype(f32))
    vecs = vecs.at[_ROW_BE_IMG].set(params["img_ln_b"].astype(f32))
    vecs = vecs.at[_ROW_B_POS].set(params["pos_linear_b"].astype(f32))
    vecs = vecs.at[_ROW_G_POS].set(params["pos_ln_g"].astype(f32))
    vecs = vecs.at[_ROW_BE_POS].set(params["pos_ln_b"].astype(f32))
    vecs = vecs.at[_ROW_G_OUT].set(params["out_ln_g"].astype(f32))
    vecs = vecs.at[_ROW_BE_OUT].set(params["out_ln_b"].astype(f32))

    kernel = functools.partial(uniter_img_emb_kernel, pos_on_mxu=pos_on_mxu)
    row_spec = lambda d: pl.BlockSpec((row_tile, d), lambda i: (i, 0))

    def _call(single_buffer_weights):
        if single_buffer_weights:
            # Grid-invariant blocks: single-buffer to reclaim VMEM (no second
            # copy of the (img_dim, H) weight).
            inv = lambda r, c: pl.BlockSpec((r, c), lambda i: (0, 0),
                                            pipeline_mode=pl.Buffered(1))
        else:
            inv = lambda r, c: pl.BlockSpec((r, c), lambda i: (0, 0))
        out = pl.pallas_call(
            kernel,
            out_shape=jax.ShapeDtypeStruct((N, H), out_dtype),
            grid_spec=pltpu.PrefetchScalarGridSpec(
                num_scalar_prefetch=0,
                grid=grid,
                in_specs=[
                    row_spec(img_dim),        # img_feat rows          (bf16)
                    row_spec(8),              # [pos(7) | mask] rows   (f32)
                    row_spec(H),              # type embedding rows    (bf16)
                    inv(img_dim, H),          # img_linear weight      (grid-invariant)
                    inv(_VEC_ROWS, H),        # packed parameter block (grid-invariant)
                ],
                out_specs=pl.BlockSpec((row_tile, H), lambda i: (i, 0)),
            ),
            compiler_params=pltpu.CompilerParams(
                dimension_semantics=("parallel",),
                vmem_limit_bytes=vmem_limit_bytes,
            ),
            interpret=interpret,
        )(x_feat, x_posmask, x_type, w_img, vecs)
        return jax.block_until_ready(out)

    try:
        out_flat = _call(True)
    except Exception:
        # pl.Buffered(1) single-buffering is not available on every jax version;
        # fall back to default double buffering (correctness identical).
        out_flat = _call(False)

    return out_flat.reshape(B, L, H)


def _init_params(key, img_dim, hidden):
    ks = jax.random.split(key, 11)
    return {
        # Stored pre-transposed relative to PyTorch: *_wT == nn.Linear.weight.T
        "img_linear_wT": 0.02 * jax.random.normal(ks[0], (img_dim, hidden), jnp.float32),
        "img_linear_b": 0.01 * jax.random.normal(ks[1], (hidden,), jnp.float32),
        "pos_linear_wT": 0.02 * jax.random.normal(ks[2], (7, hidden), jnp.float32),
        "pos_linear_b": 0.01 * jax.random.normal(ks[3], (hidden,), jnp.float32),
        "mask_embedding": 0.02 * jax.random.normal(ks[4], (2, img_dim), jnp.float32),
        "img_ln_g": 1.0 + 0.1 * jax.random.normal(ks[5], (hidden,), jnp.float32),
        "img_ln_b": 0.1 * jax.random.normal(ks[6], (hidden,), jnp.float32),
        "pos_ln_g": 1.0 + 0.1 * jax.random.normal(ks[7], (hidden,), jnp.float32),
        "pos_ln_b": 0.1 * jax.random.normal(ks[8], (hidden,), jnp.float32),
        "out_ln_g": 1.0 + 0.1 * jax.random.normal(ks[9], (hidden,), jnp.float32),
        "out_ln_b": 0.1 * jax.random.normal(ks[10], (hidden,), jnp.float32),
    }


def _reference(img_feat, img_pos_feat, type_embeddings, img_masks, params,
               *, compute_dtype=jnp.bfloat16, pos_on_mxu=False):
    # Pure-JAX forward of the PyTorch module (eval mode), mirroring the kernel's
    # quantization points (bf16 matmul operands / bf16 type embeddings, folded
    # mask-embedding, f32 LayerNorms) so the comparison isolates kernel plumbing.
    f32 = jnp.float32

    def ln(x, g, b, eps=_LN_EPS):
        mu = jnp.mean(x, -1, keepdims=True)
        var = jnp.mean((x - mu) ** 2, -1, keepdims=True)
        return (x - mu) / jnp.sqrt(var + eps) * g + b

    feat_q = img_feat.astype(compute_dtype).astype(f32)
    w_q = params["img_linear_wT"].astype(compute_dtype).astype(f32)
    im = jnp.einsum("bld,dh->blh", feat_q, w_q,
                    precision=jax.lax.Precision.HIGHEST)
    mask_proj = jnp.dot(params["mask_embedding"][1].astype(f32),
                        params["img_linear_wT"].astype(f32))
    if img_masks is not None:
        im = im + img_masks.astype(f32)[..., None] * mask_proj
    im = ln(im + params["img_linear_b"], params["img_ln_g"], params["img_ln_b"])

    if pos_on_mxu:
        pos_q = img_pos_feat.astype(compute_dtype).astype(f32)
        wp_q = params["pos_linear_wT"].astype(compute_dtype).astype(f32)
    else:
        pos_q = img_pos_feat.astype(f32)
        wp_q = params["pos_linear_wT"].astype(f32)
    pos = jnp.einsum("blk,kh->blh", pos_q, wp_q,
                     precision=jax.lax.Precision.HIGHEST)
    pos = ln(pos + params["pos_linear_b"], params["pos_ln_g"], params["pos_ln_b"])

    type_q = type_embeddings.astype(compute_dtype).astype(f32)
    return ln(im + pos + type_q, params["out_ln_g"], params["out_ln_b"])


if __name__ == "__main__":
    B, L, IMG_DIM, H = 2, 16, 64, 128   # H multiple of 128 -> lane-dense output
    key = jax.random.PRNGKey(0)
    k1, k2, k3, k4, kp = jax.random.split(key, 5)

    img_feat = jax.random.normal(k1, (B, L, IMG_DIM), jnp.float32).astype(jnp.bfloat16)
    img_pos_feat = jax.random.uniform(k2, (B, L, 7), jnp.float32)
    type_embeddings = jax.random.normal(k3, (B, L, H), jnp.float32)
    img_masks = (jax.random.uniform(k4, (B, L)) > 0.5).astype(jnp.int32)

    params = _init_params(kp, IMG_DIM, H)
    tune = _chip_tuning()

    out = uniter_image_embeddings(img_feat, img_pos_feat, type_embeddings,
                                  img_masks, params)
    out = jax.block_until_ready(out)

    ref = _reference(img_feat, img_pos_feat, type_embeddings, img_masks, params,
                     pos_on_mxu=tune["pos_on_mxu"])
    assert out.shape == (B, L, H)
    max_err = float(jnp.max(jnp.abs(out.astype(jnp.float32) - ref)))
    assert max_err < 2e-3, f"max abs err {max_err}"
    print("KERNEL_OK")
</pallas_src>

<mosaic_0001>
module attributes {stable_mosaic.version = 11 : i64} {
  func.func @uniter_img_emb_kernel(%arg0: i32, %arg1: memref<16x64xbf16, #tpu.memory_space<vmem>>, %arg2: memref<16x8xf32, #tpu.memory_space<vmem>>, %arg3: memref<16x128xbf16, #tpu.memory_space<vmem>>, %arg4: memref<64x128xbf16, #tpu.memory_space<vmem>>, %arg5: memref<24x128xf32, #tpu.memory_space<vmem>>, %arg6: memref<16x128xf32, #tpu.memory_space<vmem>>) attributes {dimension_semantics = [#tpu.dimension_semantics<parallel>], iteration_bounds = array<i64: 2>, scalar_prefetch = 0 : i64, scratch_operands = 0 : i64, tpu.core_type = #tpu.core_type<tc>, window_params = [{transform_indices = @transform_0, window_bounds = array<i64: 16, 64>}, {transform_indices = @transform_1, window_bounds = array<i64: 16, 8>}, {transform_indices = @transform_2, window_bounds = array<i64: 16, 128>}, {pipeline_mode = #tpu.pipeline_mode<synchronous>, transform_indices = @transform_3, window_bounds = array<i64: 64, 128>}, {pipeline_mode = #tpu.pipeline_mode<synchronous>, transform_indices = @transform_4, window_bounds = array<i64: 24, 128>}, {transform_indices = @transform_5, window_bounds = array<i64: 16, 128>}]} {
    %c0 = arith.constant 0 : index
    %c0_0 = arith.constant 0 : index
    %0 = vector.load %arg2[%c0, %c0_0] : memref<16x8xf32, #tpu.memory_space<vmem>>, vector<16x8xf32>
    %c0_1 = arith.constant 0 : index
    %c0_2 = arith.constant 0 : index
    %1 = vector.load %arg1[%c0_1, %c0_2] : memref<16x64xbf16, #tpu.memory_space<vmem>>, vector<16x64xbf16>
    %c0_3 = arith.constant 0 : index
    %c0_4 = arith.constant 0 : index
    %2 = vector.load %arg4[%c0_3, %c0_4] : memref<64x128xbf16, #tpu.memory_space<vmem>>, vector<64x128xbf16>
    %cst = arith.constant dense<0.000000e+00> : vector<16x128xf32>
    %3 = tpu.matmul %1, %2, %cst {dimension_numbers = #tpu.dot_dimension_numbers<[1], [0], [0], [1], [0, 0, 1, 1], [], []>} : vector<16x64xbf16>, vector<64x128xbf16>, vector<16x128xf32> -> vector<16x128xf32>
    %4 = vector.extract_strided_slice %0 {offsets = [0, 7], sizes = [16, 1], strides = [1, 1]} : vector<16x8xf32> to vector<16x1xf32>
    %c8 = arith.constant 8 : index
    %c0_5 = arith.constant 0 : index
    %5 = vector.load %arg5[%c8, %c0_5] : memref<24x128xf32, #tpu.memory_space<vmem>>, vector<1x128xf32>
    %6 = vector.broadcast %4 : vector<16x1xf32> to vector<16x128xf32>
    %7 = vector.broadcast %5 : vector<1x128xf32> to vector<16x128xf32>
    %8 = arith.mulf %6, %7 : vector<16x128xf32>
    %9 = arith.addf %3, %8 : vector<16x128xf32>
    %c9 = arith.constant 9 : index
    %c0_6 = arith.constant 0 : index
    %10 = vector.load %arg5[%c9, %c0_6] : memref<24x128xf32, #tpu.memory_space<vmem>>, vector<1x128xf32>
    %11 = vector.broadcast %10 : vector<1x128xf32> to vector<16x128xf32>
    %12 = arith.addf %9, %11 : vector<16x128xf32>
    %c10 = arith.constant 10 : index
    %c0_7 = arith.constant 0 : index
    %13 = vector.load %arg5[%c10, %c0_7] : memref<24x128xf32, #tpu.memory_space<vmem>>, vector<1x128xf32>
    %c11 = arith.constant 11 : index
    %c0_8 = arith.constant 0 : index
    %14 = vector.load %arg5[%c11, %c0_8] : memref<24x128xf32, #tpu.memory_space<vmem>>, vector<1x128xf32>
    %cst_9 = arith.constant dense<0.000000e+00> : vector<16xf32>
    %15 = vector.multi_reduction <add>, %12, %cst_9 [1] : vector<16x128xf32> to vector<16xf32>
    %16 = vector.shape_cast %15 : vector<16xf32> to vector<16x1xf32>
    %cst_10 = arith.constant 1.280000e+02 : f32
    %17 = vector.broadcast %cst_10 : f32 to vector<16x1xf32>
    %18 = arith.divf %16, %17 : vector<16x1xf32>
    %19 = arith.mulf %12, %12 : vector<16x128xf32>
    %cst_11 = arith.constant dense<0.000000e+00> : vector<16xf32>
    %20 = vector.multi_reduction <add>, %19, %cst_11 [1] : vector<16x128xf32> to vector<16xf32>
    %21 = vector.shape_cast %20 : vector<16xf32> to vector<16x1xf32>
    %cst_12 = arith.constant 1.280000e+02 : f32
    %22 = vector.broadcast %cst_12 : f32 to vector<16x1xf32>
    %23 = arith.divf %21, %22 : vector<16x1xf32>
    %24 = arith.mulf %18, %18 : vector<16x1xf32>
    %25 = arith.subf %23, %24 : vector<16x1xf32>
    %cst_13 = arith.constant 0.000000e+00 : f32
    %26 = vector.broadcast %cst_13 : f32 to vector<16x1xf32>
    %27 = arith.maximumf %25, %26 : vector<16x1xf32>
    %28 = vector.broadcast %18 : vector<16x1xf32> to vector<16x128xf32>
    %29 = arith.subf %12, %28 : vector<16x128xf32>
    %cst_14 = arith.constant 9.99999996E-13 : f32
    %30 = vector.broadcast %cst_14 : f32 to vector<16x1xf32>
    %31 = arith.addf %27, %30 : vector<16x1xf32>
    %32 = math.rsqrt %31 : vector<16x1xf32>
    %33 = vector.broadcast %32 : vector<16x1xf32> to vector<16x128xf32>
    %34 = arith.mulf %29, %33 : vector<16x128xf32>
    %35 = vector.broadcast %13 : vector<1x128xf32> to vector<16x128xf32>
    %36 = arith.mulf %34, %35 : vector<16x128xf32>
    %37 = vector.broadcast %14 : vector<1x128xf32> to vector<16x128xf32>
    %38 = arith.addf %36, %37 : vector<16x128xf32>
    %39 = vector.extract_strided_slice %0 {offsets = [0, 0], sizes = [16, 1], strides = [1, 1]} : vector<16x8xf32> to vector<16x1xf32>
    %c0_15 = arith.constant 0 : index
    %c0_16 = arith.constant 0 : index
    %40 = vector.load %arg5[%c0_15, %c0_16] : memref<24x128xf32, #tpu.memory_space<vmem>>, vector<1x128xf32>
    %41 = vector.broadcast %39 : vector<16x1xf32> to vector<16x128xf32>
    %42 = vector.broadcast %40 : vector<1x128xf32> to vector<16x128xf32>
    %43 = arith.mulf %41, %42 : vector<16x128xf32>
    %44 = vector.extract_strided_slice %0 {offsets = [0, 1], sizes = [16, 1], strides = [1, 1]} : vector<16x8xf32> to vector<16x1xf32>
    %c1 = arith.constant 1 : index
    %c0_17 = arith.constant 0 : index
    %45 = vector.load %arg5[%c1, %c0_17] : memref<24x128xf32, #tpu.memory_space<vmem>>, vector<1x128xf32>
    %46 = vector.broadcast %44 : vector<16x1xf32> to vector<16x128xf32>
    %47 = vector.broadcast %45 : vector<1x128xf32> to vector<16x128xf32>
    %48 = arith.mulf %46, %47 : vector<16x128xf32>
    %49 = arith.addf %43, %48 : vector<16x128xf32>
    %50 = vector.extract_strided_slice %0 {offsets = [0, 2], sizes = [16, 1], strides = [1, 1]} : vector<16x8xf32> to vector<16x1xf32>
    %c2 = arith.constant 2 : index
    %c0_18 = arith.constant 0 : index
    %51 = vector.load %arg5[%c2, %c0_18] : memref<24x128xf32, #tpu.memory_space<vmem>>, vector<1x128xf32>
    %52 = vector.broadcast %50 : vector<16x1xf32> to vector<16x128xf32>
    %53 = vector.broadcast %51 : vector<1x128xf32> to vector<16x128xf32>
    %54 = arith.mulf %52, %53 : vector<16x128xf32>
    %55 = arith.addf %49, %54 : vector<16x128xf32>
    %56 = vector.extract_strided_slice %0 {offsets = [0, 3], sizes = [16, 1], strides = [1, 1]} : vector<16x8xf32> to vector<16x1xf32>
    %c3 = arith.constant 3 : index
    %c0_19 = arith.constant 0 : index
    %57 = vector.load %arg5[%c3, %c0_19] : memref<24x128xf32, #tpu.memory_space<vmem>>, vector<1x128xf32>
    %58 = vector.broadcast %56 : vector<16x1xf32> to vector<16x128xf32>
    %59 = vector.broadcast %57 : vector<1x128xf32> to vector<16x128xf32>
    %60 = arith.mulf %58, %59 : vector<16x128xf32>
    %61 = arith.addf %55, %60 : vector<16x128xf32>
    %62 = vector.extract_strided_slice %0 {offsets = [0, 4], sizes = [16, 1], strides = [1, 1]} : vector<16x8xf32> to vector<16x1xf32>
    %c4 = arith.constant 4 : index
    %c0_20 = arith.constant 0 : index
    %63 = vector.load %arg5[%c4, %c0_20] : memref<24x128xf32, #tpu.memory_space<vmem>>, vector<1x128xf32>
    %64 = vector.broadcast %62 : vector<16x1xf32> to vector<16x128xf32>
    %65 = vector.broadcast %63 : vector<1x128xf32> to vector<16x128xf32>
    %66 = arith.mulf %64, %65 : vector<16x128xf32>
    %67 = arith.addf %61, %66 : vector<16x128xf32>
    %68 = vector.extract_strided_slice %0 {offsets = [0, 5], sizes = [16, 1], strides = [1, 1]} : vector<16x8xf32> to vector<16x1xf32>
    %c5 = arith.constant 5 : index
    %c0_21 = arith.constant 0 : index
    %69 = vector.load %arg5[%c5, %c0_21] : memref<24x128xf32, #tpu.memory_space<vmem>>, vector<1x128xf32>
    %70 = vector.broadcast %68 : vector<16x1xf32> to vector<16x128xf32>
    %71 = vector.broadcast %69 : vector<1x128xf32> to vector<16x128xf32>
    %72 = arith.mulf %70, %71 : vector<16x128xf32>
    %73 = arith.addf %67, %72 : vector<16x128xf32>
    %74 = vector.extract_strided_slice %0 {offsets = [0, 6], sizes = [16, 1], strides = [1, 1]} : vector<16x8xf32> to vector<16x1xf32>
    %c6 = arith.constant 6 : index
    %c0_22 = arith.constant 0 : index
    %75 = vector.load %arg5[%c6, %c0_22] : memref<24x128xf32, #tpu.memory_space<vmem>>, vector<1x128xf32>
    %76 = vector.broadcast %74 : vector<16x1xf32> to vector<16x128xf32>
    %77 = vector.broadcast %75 : vector<1x128xf32> to vector<16x128xf32>
    %78 = arith.mulf %76, %77 : vector<16x128xf32>
    %79 = arith.addf %73, %78 : vector<16x128xf32>
    %c12 = arith.constant 12 : index
    %c0_23 = arith.constant 0 : index
    %80 = vector.load %arg5[%c12, %c0_23] : memref<24x128xf32, #tpu.memory_space<vmem>>, vector<1x128xf32>
    %81 = vector.broadcast %80 : vector<1x128xf32> to vector<16x128xf32>
    %82 = arith.addf %79, %81 : vector<16x128xf32>
    %c13 = arith.constant 13 : index
    %c0_24 = arith.constant 0 : index
    %83 = vector.load %arg5[%c13, %c0_24] : memref<24x128xf32, #tpu.memory_space<vmem>>, vector<1x128xf32>
    %c14 = arith.constant 14 : index
    %c0_25 = arith.constant 0 : index
    %84 = vector.load %arg5[%c14, %c0_25] : memref<24x128xf32, #tpu.memory_space<vmem>>, vector<1x128xf32>
    %cst_26 = arith.constant dense<0.000000e+00> : vector<16xf32>
    %85 = vector.multi_reduction <add>, %82, %cst_26 [1] : vector<16x128xf32> to vector<16xf32>
    %86 = vector.shape_cast %85 : vector<16xf32> to vector<16x1xf32>
    %cst_27 = arith.constant 1.280000e+02 : f32
    %87 = vector.broadcast %cst_27 : f32 to vector<16x1xf32>
    %88 = arith.divf %86, %87 : vector<16x1xf32>
    %89 = arith.mulf %82, %82 : vector<16x128xf32>
    %cst_28 = arith.constant dense<0.000000e+00> : vector<16xf32>
    %90 = vector.multi_reduction <add>, %89, %cst_28 [1] : vector<16x128xf32> to vector<16xf32>
    %91 = vector.shape_cast %90 : vector<16xf32> to vector<16x1xf32>
    %cst_29 = arith.constant 1.280000e+02 : f32
    %92 = vector.broadcast %cst_29 : f32 to vector<16x1xf32>
    %93 = arith.divf %91, %92 : vector<16x1xf32>
    %94 = arith.mulf %88, %88 : vector<16x1xf32>
    %95 = arith.subf %93, %94 : vector<16x1xf32>
    %cst_30 = arith.constant 0.000000e+00 : f32
    %96 = vector.broadcast %cst_30 : f32 to vector<16x1xf32>
    %97 = arith.maximumf %95, %96 : vector<16x1xf32>
    %98 = vector.broadcast %88 : vector<16x1xf32> to vector<16x128xf32>
    %99 = arith.subf %82, %98 : vector<16x128xf32>
    %cst_31 = arith.constant 9.99999996E-13 : f32
    %100 = vector.broadcast %cst_31 : f32 to vector<16x1xf32>
    %101 = arith.addf %97, %100 : vector<16x1xf32>
    %102 = math.rsqrt %101 : vector<16x1xf32>
    %103 = vector.broadcast %102 : vector<16x1xf32> to vector<16x128xf32>
    %104 = arith.mulf %99, %103 : vector<16x128xf32>
    %105 = vector.broadcast %83 : vector<1x128xf32> to vector<16x128xf32>
    %106 = arith.mulf %104, %105 : vector<16x128xf32>
    %107 = vector.broadcast %84 : vector<1x128xf32> to vector<16x128xf32>
    %108 = arith.addf %106, %107 : vector<16x128xf32>
    %109 = arith.addf %38, %108 : vector<16x128xf32>
    %c0_32 = arith.constant 0 : index
    %c0_33 = arith.constant 0 : index
    %110 = vector.load %arg3[%c0_32, %c0_33] : memref<16x128xbf16, #tpu.memory_space<vmem>>, vector<16x128xbf16>
    %111 = arith.extf %110 : vector<16x128xbf16> to vector<16x128xf32>
    %112 = arith.addf %109, %111 : vector<16x128xf32>
    %c15 = arith.constant 15 : index
    %c0_34 = arith.constant 0 : index
    %113 = vector.load %arg5[%c15, %c0_34] : memref<24x128xf32, #tpu.memory_space<vmem>>, vector<1x128xf32>
    %c16 = arith.constant 16 : index
    %c0_35 = arith.constant 0 : index
    %114 = vector.load %arg5[%c16, %c0_35] : memref<24x128xf32, #tpu.memory_space<vmem>>, vector<1x128xf32>
    %cst_36 = arith.constant dense<0.000000e+00> : vector<16xf32>
    %115 = vector.multi_reduction <add>, %112, %cst_36 [1] : vector<16x128xf32> to vector<16xf32>
    %116 = vector.shape_cast %115 : vector<16xf32> to vector<16x1xf32>
    %cst_37 = arith.constant 1.280000e+02 : f32
    %117 = vector.broadcast %cst_37 : f32 to vector<16x1xf32>
    %118 = arith.divf %116, %117 : vector<16x1xf32>
    %119 = arith.mulf %112, %112 : vector<16x128xf32>
    %cst_38 = arith.constant dense<0.000000e+00> : vector<16xf32>
    %120 = vector.multi_reduction <add>, %119, %cst_38 [1] : vector<16x128xf32> to vector<16xf32>
    %121 = vector.shape_cast %120 : vector<16xf32> to vector<16x1xf32>
    %cst_39 = arith.constant 1.280000e+02 : f32
    %122 = vector.broadcast %cst_39 : f32 to vector<16x1xf32>
    %123 = arith.divf %121, %122 : vector<16x1xf32>
    %124 = arith.mulf %118, %118 : vector<16x1xf32>
    %125 = arith.subf %123, %124 : vector<16x1xf32>
    %cst_40 = arith.constant 0.000000e+00 : f32
    %126 = vector.broadcast %cst_40 : f32 to vector<16x1xf32>
    %127 = arith.maximumf %125, %126 : vector<16x1xf32>
    %128 = vector.broadcast %118 : vector<16x1xf32> to vector<16x128xf32>
    %129 = arith.subf %112, %128 : vector<16x128xf32>
    %cst_41 = arith.constant 9.99999996E-13 : f32
    %130 = vector.broadcast %cst_41 : f32 to vector<16x1xf32>
    %131 = arith.addf %127, %130 : vector<16x1xf32>
    %132 = math.rsqrt %131 : vector<16x1xf32>
    %133 = vector.broadcast %132 : vector<16x1xf32> to vector<16x128xf32>
    %134 = arith.mulf %129, %133 : vector<16x128xf32>
    %135 = vector.broadcast %113 : vector<1x128xf32> to vector<16x128xf32>
    %136 = arith.mulf %134, %135 : vector<16x128xf32>
    %137 = vector.broadcast %114 : vector<1x128xf32> to vector<16x128xf32>
    %138 = arith.addf %136, %137 : vector<16x128xf32>
    %c0_42 = arith.constant 0 : index
    %c0_43 = arith.constant 0 : index
    %139 = vector.load %arg6[%c0_42, %c0_43] : memref<16x128xf32, #tpu.memory_space<vmem>>, vector<16x128xf32>
    tpu.vector_store %arg6[%c0_42, %c0_43], %138 {strides = array<i32>} : memref<16x128xf32, #tpu.memory_space<vmem>>, vector<16x128xf32>,
    return
  }
  func.func @transform_0(%arg0: i32) -> (i32, i32) {
    %c0_i32 = arith.constant 0 : i32
    %c0_i32_0 = arith.constant 0 : i32
    return %arg0, %c0_i32 : i32, i32
  }
  func.func @transform_1(%arg0: i32) -> (i32, i32) {
    %c0_i32 = arith.constant 0 : i32
    %c0_i32_0 = arith.constant 0 : i32
    return %arg0, %c0_i32 : i32, i32
  }
  func.func @transform_2(%arg0: i32) -> (i32, i32) {
    %c0_i32 = arith.constant 0 : i32
    %c0_i32_0 = arith.constant 0 : i32
    return %arg0, %c0_i32 : i32, i32
  }
  func.func @transform_3(%arg0: i32) -> (i32, i32) {
    %c0_i32 = arith.constant 0 : i32
    %c0_i32_0 = arith.constant 0 : i32
    %c0_i32_1 = arith.constant 0 : i32
    return %c0_i32, %c0_i32_0 : i32, i32
  }
  func.func @transform_4(%arg0: i32) -> (i32, i32) {
    %c0_i32 = arith.constant 0 : i32
    %c0_i32_0 = arith.constant 0 : i32
    %c0_i32_1 = arith.constant 0 : i32
    return %c0_i32, %c0_i32_0 : i32, i32
  }
  func.func @transform_5(%arg0: i32) -> (i32, i32) {
    %c0_i32 = arith.constant 0 : i32
    %c0_i32_0 = arith.constant 0 : i32
    return %arg0, %c0_i32 : i32, i32
  }
}

module attributes {stable_mosaic.version = 11 : i64} {
  func.func @uniter_img_emb_kernel(%arg0: i32, %arg1: memref<16x64xbf16, #tpu.memory_space<vmem>>, %arg2: memref<16x8xf32, #tpu.memory_space<vmem>>, %arg3: memref<16x128xbf16, #tpu.memory_space<vmem>>, %arg4: memref<64x128xbf16, #tpu.memory_space<vmem>>, %arg5: memref<24x128xf32, #tpu.memory_space<vmem>>, %arg6: memref<16x128xf32, #tpu.memory_space<vmem>>) attributes {dimension_semantics = [#tpu.dimension_semantics<parallel>], iteration_bounds = array<i64: 2>, scalar_prefetch = 0 : i64, scratch_operands = 0 : i64, tpu.core_type = #tpu.core_type<tc>, window_params = [{transform_indices = @transform_0, window_bounds = array<i64: 16, 64>}, {transform_indices = @transform_1, window_bounds = array<i64: 16, 8>}, {transform_indices = @transform_2, window_bounds = array<i64: 16, 128>}, {pipeline_mode = #tpu.pipeline_mode<synchronous>, transform_indices = @transform_3, window_bounds = array<i64: 64, 128>}, {pipeline_mode = #tpu.pipeline_mode<synchronous>, transform_indices = @transform_4, window_bounds = array<i64: 24, 128>}, {transform_indices = @transform_5, window_bounds = array<i64: 16, 128>}]} {
    %c0 = arith.constant 0 : index
    %c0_0 = arith.constant 0 : index
    %0 = vector.load %arg2[%c0, %c0_0] : memref<16x8xf32, #tpu.memory_space<vmem>>, vector<16x8xf32>
    %c0_1 = arith.constant 0 : index
    %c0_2 = arith.constant 0 : index
    %1 = vector.load %arg1[%c0_1, %c0_2] : memref<16x64xbf16, #tpu.memory_space<vmem>>, vector<16x64xbf16>
    %c0_3 = arith.constant 0 : index
    %c0_4 = arith.constant 0 : index
    %2 = vector.load %arg4[%c0_3, %c0_4] : memref<64x128xbf16, #tpu.memory_space<vmem>>, vector<64x128xbf16>
    %cst = arith.constant dense<0.000000e+00> : vector<16x128xf32>
    %3 = tpu.matmul %1, %2, %cst {dimension_numbers = #tpu.dot_dimension_numbers<[1], [0], [0], [1], [0, 0, 1, 1], [], []>} : vector<16x64xbf16>, vector<64x128xbf16>, vector<16x128xf32> -> vector<16x128xf32>
    %4 = vector.extract_strided_slice %0 {offsets = [0, 7], sizes = [16, 1], strides = [1, 1]} : vector<16x8xf32> to vector<16x1xf32>
    %c8 = arith.constant 8 : index
    %c0_5 = arith.constant 0 : index
    %5 = vector.load %arg5[%c8, %c0_5] : memref<24x128xf32, #tpu.memory_space<vmem>>, vector<1x128xf32>
    %6 = vector.broadcast %4 : vector<16x1xf32> to vector<16x128xf32>
    %7 = vector.broadcast %5 : vector<1x128xf32> to vector<16x128xf32>
    %8 = arith.mulf %6, %7 : vector<16x128xf32>
    %9 = arith.addf %3, %8 : vector<16x128xf32>
    %c9 = arith.constant 9 : index
    %c0_6 = arith.constant 0 : index
    %10 = vector.load %arg5[%c9, %c0_6] : memref<24x128xf32, #tpu.memory_space<vmem>>, vector<1x128xf32>
    %11 = vector.broadcast %10 : vector<1x128xf32> to vector<16x128xf32>
    %12 = arith.addf %9, %11 : vector<16x128xf32>
    %c10 = arith.constant 10 : index
    %c0_7 = arith.constant 0 : index
    %13 = vector.load %arg5[%c10, %c0_7] : memref<24x128xf32, #tpu.memory_space<vmem>>, vector<1x128xf32>
    %c11 = arith.constant 11 : index
    %c0_8 = arith.constant 0 : index
    %14 = vector.load %arg5[%c11, %c0_8] : memref<24x128xf32, #tpu.memory_space<vmem>>, vector<1x128xf32>
    %cst_9 = arith.constant dense<0.000000e+00> : vector<16xf32>
    %15 = vector.multi_reduction <add>, %12, %cst_9 [1] : vector<16x128xf32> to vector<16xf32>
    %16 = vector.shape_cast %15 : vector<16xf32> to vector<16x1xf32>
    %cst_10 = arith.constant 1.280000e+02 : f32
    %17 = vector.broadcast %cst_10 : f32 to vector<16x1xf32>
    %18 = arith.divf %16, %17 : vector<16x1xf32>
    %19 = arith.mulf %12, %12 : vector<16x128xf32>
    %cst_11 = arith.constant dense<0.000000e+00> : vector<16xf32>
    %20 = vector.multi_reduction <add>, %19, %cst_11 [1] : vector<16x128xf32> to vector<16xf32>
    %21 = vector.shape_cast %20 : vector<16xf32> to vector<16x1xf32>
    %cst_12 = arith.constant 1.280000e+02 : f32
    %22 = vector.broadcast %cst_12 : f32 to vector<16x1xf32>
    %23 = arith.divf %21, %22 : vector<16x1xf32>
    %24 = arith.mulf %18, %18 : vector<16x1xf32>
    %25 = arith.subf %23, %24 : vector<16x1xf32>
    %cst_13 = arith.constant 0.000000e+00 : f32
    %26 = vector.broadcast %cst_13 : f32 to vector<16x1xf32>
    %27 = arith.maximumf %25, %26 : vector<16x1xf32>
    %28 = vector.broadcast %18 : vector<16x1xf32> to vector<16x128xf32>
    %29 = arith.subf %12, %28 : vector<16x128xf32>
    %cst_14 = arith.constant 9.99999996E-13 : f32
    %30 = vector.broadcast %cst_14 : f32 to vector<16x1xf32>
    %31 = arith.addf %27, %30 : vector<16x1xf32>
    %32 = math.rsqrt %31 : vector<16x1xf32>
    %33 = vector.broadcast %32 : vector<16x1xf32> to vector<16x128xf32>
    %34 = arith.mulf %29, %33 : vector<16x128xf32>
    %35 = vector.broadcast %13 : vector<1x128xf32> to vector<16x128xf32>
    %36 = arith.mulf %34, %35 : vector<16x128xf32>
    %37 = vector.broadcast %14 : vector<1x128xf32> to vector<16x128xf32>
    %38 = arith.addf %36, %37 : vector<16x128xf32>
    %39 = vector.extract_strided_slice %0 {offsets = [0, 0], sizes = [16, 1], strides = [1, 1]} : vector<16x8xf32> to vector<16x1xf32>
    %c0_15 = arith.constant 0 : index
    %c0_16 = arith.constant 0 : index
    %40 = vector.load %arg5[%c0_15, %c0_16] : memref<24x128xf32, #tpu.memory_space<vmem>>, vector<1x128xf32>
    %41 = vector.broadcast %39 : vector<16x1xf32> to vector<16x128xf32>
    %42 = vector.broadcast %40 : vector<1x128xf32> to vector<16x128xf32>
    %43 = arith.mulf %41, %42 : vector<16x128xf32>
    %44 = vector.extract_strided_slice %0 {offsets = [0, 1], sizes = [16, 1], strides = [1, 1]} : vector<16x8xf32> to vector<16x1xf32>
    %c1 = arith.constant 1 : index
    %c0_17 = arith.constant 0 : index
    %45 = vector.load %arg5[%c1, %c0_17] : memref<24x128xf32, #tpu.memory_space<vmem>>, vector<1x128xf32>
    %46 = vector.broadcast %44 : vector<16x1xf32> to vector<16x128xf32>
    %47 = vector.broadcast %45 : vector<1x128xf32> to vector<16x128xf32>
    %48 = arith.mulf %46, %47 : vector<16x128xf32>
    %49 = arith.addf %43, %48 : vector<16x128xf32>
    %50 = vector.extract_strided_slice %0 {offsets = [0, 2], sizes = [16, 1], strides = [1, 1]} : vector<16x8xf32> to vector<16x1xf32>
    %c2 = arith.constant 2 : index
    %c0_18 = arith.constant 0 : index
    %51 = vector.load %arg5[%c2, %c0_18] : memref<24x128xf32, #tpu.memory_space<vmem>>, vector<1x128xf32>
    %52 = vector.broadcast %50 : vector<16x1xf32> to vector<16x128xf32>
    %53 = vector.broadcast %51 : vector<1x128xf32> to vector<16x128xf32>
    %54 = arith.mulf %52, %53 : vector<16x128xf32>
    %55 = arith.addf %49, %54 : vector<16x128xf32>
    %56 = vector.extract_strided_slice %0 {offsets = [0, 3], sizes = [16, 1], strides = [1, 1]} : vector<16x8xf32> to vector<16x1xf32>
    %c3 = arith.constant 3 : index
    %c0_19 = arith.constant 0 : index
    %57 = vector.load %arg5[%c3, %c0_19] : memref<24x128xf32, #tpu.memory_space<vmem>>, vector<1x128xf32>
    %58 = vector.broadcast %56 : vector<16x1xf32> to vector<16x128xf32>
    %59 = vector.broadcast %57 : vector<1x128xf32> to vector<16x128xf32>
    %60 = arith.mulf %58, %59 : vector<16x128xf32>
    %61 = arith.addf %55, %60 : vector<16x128xf32>
    %62 = vector.extract_strided_slice %0 {offsets = [0, 4], sizes = [16, 1], strides = [1, 1]} : vector<16x8xf32> to vector<16x1xf32>
    %c4 = arith.constant 4 : index
    %c0_20 = arith.constant 0 : index
    %63 = vector.load %arg5[%c4, %c0_20] : memref<24x128xf32, #tpu.memory_space<vmem>>, vector<1x128xf32>
    %64 = vector.broadcast %62 : vector<16x1xf32> to vector<16x128xf32>
    %65 = vector.broadcast %63 : vector<1x128xf32> to vector<16x128xf32>
    %66 = arith.mulf %64, %65 : vector<16x128xf32>
    %67 = arith.addf %61, %66 : vector<16x128xf32>
    %68 = vector.extract_strided_slice %0 {offsets = [0, 5], sizes = [16, 1], strides = [1, 1]} : vector<16x8xf32> to vector<16x1xf32>
    %c5 = arith.constant 5 : index
    %c0_21 = arith.constant 0 : index
    %69 = vector.load %arg5[%c5, %c0_21] : memref<24x128xf32, #tpu.memory_space<vmem>>, vector<1x128xf32>
    %70 = vector.broadcast %68 : vector<16x1xf32> to vector<16x128xf32>
    %71 = vector.broadcast %69 : vector<1x128xf32> to vector<16x128xf32>
    %72 = arith.mulf %70, %71 : vector<16x128xf32>
    %73 = arith.addf %67, %72 : vector<16x128xf32>
    %74 = vector.extract_strided_slice %0 {offsets = [0, 6], sizes = [16, 1], strides = [1, 1]} : vector<16x8xf32> to vector<16x1xf32>
    %c6 = arith.constant 6 : index
    %c0_22 = arith.constant 0 : index
    %75 = vector.load %arg5[%c6, %c0_22] : memref<24x128xf32, #tpu.memory_space<vmem>>, vector<1x128xf32>
    %76 = vector.broadcast %74 : vector<16x1xf32> to vector<16x128xf32>
    %77 = vector.broadcast %75 : vector<1x128xf32> to vector<16x128xf32>
    %78 = arith.mulf %76, %77 : vector<16x128xf32>
    %79 = arith.addf %73, %78 : vector<16x128xf32>
    %c12 = arith.constant 12 : index
    %c0_23 = arith.constant 0 : index
    %80 = vector.load %arg5[%c12, %c0_23] : memref<24x128xf32, #tpu.memory_space<vmem>>, vector<1x128xf32>
    %81 = vector.broadcast %80 : vector<1x128xf32> to vector<16x128xf32>
    %82 = arith.addf %79, %81 : vector<16x128xf32>
    %c13 = arith.constant 13 : index
    %c0_24 = arith.constant 0 : index
    %83 = vector.load %arg5[%c13, %c0_24] : memref<24x128xf32, #tpu.memory_space<vmem>>, vector<1x128xf32>
    %c14 = arith.constant 14 : index
    %c0_25 = arith.constant 0 : index
    %84 = vector.load %arg5[%c14, %c0_25] : memref<24x128xf32, #tpu.memory_space<vmem>>, vector<1x128xf32>
    %cst_26 = arith.constant dense<0.000000e+00> : vector<16xf32>
    %85 = vector.multi_reduction <add>, %82, %cst_26 [1] : vector<16x128xf32> to vector<16xf32>
    %86 = vector.shape_cast %85 : vector<16xf32> to vector<16x1xf32>
    %cst_27 = arith.constant 1.280000e+02 : f32
    %87 = vector.broadcast %cst_27 : f32 to vector<16x1xf32>
    %88 = arith.divf %86, %87 : vector<16x1xf32>
    %89 = arith.mulf %82, %82 : vector<16x128xf32>
    %cst_28 = arith.constant dense<0.000000e+00> : vector<16xf32>
    %90 = vector.multi_reduction <add>, %89, %cst_28 [1] : vector<16x128xf32> to vector<16xf32>
    %91 = vector.shape_cast %90 : vector<16xf32> to vector<16x1xf32>
    %cst_29 = arith.constant 1.280000e+02 : f32
    %92 = vector.broadcast %cst_29 : f32 to vector<16x1xf32>
    %93 = arith.divf %91, %92 : vector<16x1xf32>
    %94 = arith.mulf %88, %88 : vector<16x1xf32>
    %95 = arith.subf %93, %94 : vector<16x1xf32>
    %cst_30 = arith.constant 0.000000e+00 : f32
    %96 = vector.broadcast %cst_30 : f32 to vector<16x1xf32>
    %97 = arith.maximumf %95, %96 : vector<16x1xf32>
    %98 = vector.broadcast %88 : vector<16x1xf32> to vector<16x128xf32>
    %99 = arith.subf %82, %98 : vector<16x128xf32>
    %cst_31 = arith.constant 9.99999996E-13 : f32
    %100 = vector.broadcast %cst_31 : f32 to vector<16x1xf32>
    %101 = arith.addf %97, %100 : vector<16x1xf32>
    %102 = math.rsqrt %101 : vector<16x1xf32>
    %103 = vector.broadcast %102 : vector<16x1xf32> to vector<16x128xf32>
    %104 = arith.mulf %99, %103 : vector<16x128xf32>
    %105 = vector.broadcast %83 : vector<1x128xf32> to vector<16x128xf32>
    %106 = arith.mulf %104, %105 : vector<16x128xf32>
    %107 = vector.broadcast %84 : vector<1x128xf32> to vector<16x128xf32>
    %108 = arith.addf %106, %107 : vector<16x128xf32>
    %109 = arith.addf %38, %108 : vector<16x128xf32>
    %c0_32 = arith.constant 0 : index
    %c0_33 = arith.constant 0 : index
    %110 = vector.load %arg3[%c0_32, %c0_33] : memref<16x128xbf16, #tpu.memory_space<vmem>>, vector<16x128xbf16>
    %111 = arith.extf %110 : vector<16x128xbf16> to vector<16x128xf32>
    %112 = arith.addf %109, %111 : vector<16x128xf32>
    %c15 = arith.constant 15 : index
    %c0_34 = arith.constant 0 : index
    %113 = vector.load %arg5[%c15, %c0_34] : memref<24x128xf32, #tpu.memory_space<vmem>>, vector<1x128xf32>
    %c16 = arith.constant 16 : index
    %c0_35 = arith.constant 0 : index
    %114 = vector.load %arg5[%c16, %c0_35] : memref<24x128xf32, #tpu.memory_space<vmem>>, vector<1x128xf32>
    %cst_36 = arith.constant dense<0.000000e+00> : vector<16xf32>
    %115 = vector.multi_reduction <add>, %112, %cst_36 [1] : vector<16x128xf32> to vector<16xf32>
    %116 = vector.shape_cast %115 : vector<16xf32> to vector<16x1xf32>
    %cst_37 = arith.constant 1.280000e+02 : f32
    %117 = vector.broadcast %cst_37 : f32 to vector<16x1xf32>
    %118 = arith.divf %116, %117 : vector<16x1xf32>
    %119 = arith.mulf %112, %112 : vector<16x128xf32>
    %cst_38 = arith.constant dense<0.000000e+00> : vector<16xf32>
    %120 = vector.multi_reduction <add>, %119, %cst_38 [1] : vector<16x128xf32> to vector<16xf32>
    %121 = vector.shape_cast %120 : vector<16xf32> to vector<16x1xf32>
    %cst_39 = arith.constant 1.280000e+02 : f32
    %122 = vector.broadcast %cst_39 : f32 to vector<16x1xf32>
    %123 = arith.divf %121, %122 : vector<16x1xf32>
    %124 = arith.mulf %118, %118 : vector<16x1xf32>
    %125 = arith.subf %123, %124 : vector<16x1xf32>
    %cst_40 = arith.constant 0.000000e+00 : f32
    %126 = vector.broadcast %cst_40 : f32 to vector<16x1xf32>
    %127 = arith.maximumf %125, %126 : vector<16x1xf32>
    %128 = vector.broadcast %118 : vector<16x1xf32> to vector<16x128xf32>
    %129 = arith.subf %112, %128 : vector<16x128xf32>
    %cst_41 = arith.constant 9.99999996E-13 : f32
    %130 = vector.broadcast %cst_41 : f32 to vector<16x1xf32>
    %131 = arith.addf %127, %130 : vector<16x1xf32>
    %132 = math.rsqrt %131 : vector<16x1xf32>
    %133 = vector.broadcast %132 : vector<16x1xf32> to vector<16x128xf32>
    %134 = arith.mulf %129, %133 : vector<16x128xf32>
    %135 = vector.broadcast %113 : vector<1x128xf32> to vector<16x128xf32>
    %136 = arith.mulf %134, %135 : vector<16x128xf32>
    %137 = vector.broadcast %114 : vector<1x128xf32> to vector<16x128xf32>
    %138 = arith.addf %136, %137 : vector<16x128xf32>
    %c0_42 = arith.constant 0 : index
    %c0_43 = arith.constant 0 : index
    %139 = vector.load %arg6[%c0_42, %c0_43] : memref<16x128xf32, #tpu.memory_space<vmem>>, vector<16x128xf32>
    tpu.vector_store %arg6[%c0_42, %c0_43], %138 {strides = array<i32>} : memref<16x128xf32, #tpu.memory_space<vmem>>, vector<16x128xf32>,
    return
  }
  func.func @transform_0(%arg0: i32) -> (i32, i32) {
    %c0_i32 = arith.constant 0 : i32
    %c0_i32_0 = arith.constant 0 : i32
    return %arg0, %c0_i32 : i32, i32
  }
  func.func @transform_1(%arg0: i32) -> (i32, i32) {
    %c0_i32 = arith.constant 0 : i32
    %c0_i32_0 = arith.constant 0 : i32
    return %arg0, %c0_i32 : i32, i32
  }
  func.func @transform_2(%arg0: i32) -> (i32, i32) {
    %c0_i32 = arith.constant 0 : i32
    %c0_i32_0 = arith.constant 0 : i32
    return %arg0, %c0_i32 : i32, i32
  }
  func.func @transform_3(%arg0: i32) -> (i32, i32) {
    %c0_i32 = arith.constant 0 : i32
    %c0_i32_0 = arith.constant 0 : i32
    %c0_i32_1 = arith.constant 0 : i32
    return %c0_i32, %c0_i32_0 : i32, i32
  }
  func.func @transform_4(%arg0: i32) -> (i32, i32) {
    %c0_i32 = arith.constant 0 : i32
    %c0_i32_0 = arith.constant 0 : i32
    %c0_i32_1 = arith.constant 0 : i32
    return %c0_i32, %c0_i32_0 : i32, i32
  }
  func.func @transform_5(%arg0: i32) -> (i32, i32) {
    %c0_i32 = arith.constant 0 : i32
    %c0_i32_0 = arith.constant 0 : i32
    return %arg0, %c0_i32 : i32, i32
  }
}

</mosaic_0001>

<bundles_post_ra>
// kernel: tpu_custom_call.1
= control target key start
LH: loop header
LB: loop body
LE: loop exit
PB: predicated region body
PF: predicated region fallthrough
CT: control target
= control target key end

     0   :  { %10 = vsyncpa [#allocation3], 0  ;;  %s1380_s0 = inlined_call_operand.vmem [shape: bf16[32,64], index: 0, kind: input, shape index: {}]   ;;  %s1381_s1 = inlined_call_operand.vmem [shape: f32[32,8], index: 1, kind: input, shape index: {}]   ;;  %s1382_s2 = inlined_call_operand.hbm [shape: bf16[32,128], index: 2, kind: input, shape index: {}]   ;;  %s1383_s3 = inlined_call_operand.vmem [shape: bf16[64,128], index: 3, kind: input, shape index: {}]   ;;  %s1384_s4 = inlined_call_operand.hbm [shape: f32[24,128], index: 4, kind: input, shape index: {}]   ;;  %s1385_s5 = inlined_call_operand.hbm [shape: f32[32,128], index: 5, kind: output, shape index: {}]  }
   0x1   :  { %12 = vsyncpa [#allocation3 + $0x1], 0 }
   0x2   :  { %13 = vsyncpa [#allocation6], 0 }
   0x3   :  { %14 = vsyncpa [#allocation4], 0 }
   0x4   :  { %16 = vsyncpa [#allocation4 + $0x1], 0  ;;  %s1144_s18 = smov 0   ;;  %s1146_s19 = smov 0  }
   0x5   :  { %s1148_s20 = smov 0   ;;  %s1150_s21 = smov 0  }
   0x6 LB: > { %s1165_s22 = sadd.s32 4294967295, %s1093_s21   ;;  %s797_s23 = sadd.s32 4294967294, %s1093_s21   ;;  %s1093_s21 = sphi %s1150_s21, %s1405_s21   ;;  %s1089_s20 = sphi %s1148_s20, %s1404_s20   ;;  %s1085_s19 = sphi %s1146_s19, %s1403_s19   ;;  %s1081_s18 = sphi %s1144_s18, %s1402_s18  }
   0x7   : > { %p94_p0 = scmp.ne.s32.totalorder %s1085_s19, %s1081_s18  ;;  %p1386_p1 = scmp.eq.s32.totalorder %s1165_s22, 0 }
   0x8   : > { %p166_p3 = scmp.eq.s32.totalorder %s797_s23, 1  ;;  %p798_p5 = scmp.ge.s32.totalorder %s1093_s21, 1 }
   0x9   : > { %p1174_p4 = por %p1386_p1, %p94_p0  ;;  %p173_p7 = scmp.lt.s32.totalorder %s1093_s21, 3 }
   0xa   : > { %p1179_p6 = por %p166_p3, %p94_p0  ;;  %s1095_s27 = smov [#allocation5]  }
   0xb   : > { %s1389_s24 = scalar_select %p1174_p4, 1, 0 }
   0xc   : > { %s1390_s25 = scalar_select %p1179_p6, 1, 0 }
   0xd   : > { %p1184_p8 = pnand %p798_p5, %p173_p7  ;;  %s188_s28 = sshll.u32 %s1095_s27, 4  ;;  %s1188_s28 = int_to_ptr.vmem [resolvable:$true] %s188_s28 }
   0xe   : > { %s1200_s30 = sadd.s32 1, %s1093_s21   ;;  %s81_s6 = sadd.s32 1, %s1089_s20 }
   0xf   : > { %s1391_s26 = scalar_select %p1184_p8, 1, 0 }
  0x10   : > { %p870_p9 = pneg %p1184_p8  ;;  %s78_s7 = ssub.s32 %s1093_s21, %s1200_s30 }
  0x11   : > { %s965_s10 = scalar_lea.hbm %s1384_s4, 384 }
  0x12   : > { %p1195_p11 = pnand %p870_p9, %p1386_p1  ;;  %p966_p12 = scmp.ne.s32.totalorder %s1384_s4, %s965_s10 }
  0x13   : > { %p972_p5 = scmp.lt.u32.totalorder %s965_s10, %s1384_s4 }
  0x14   : > { %p967_p13 = pneg %p1195_p11 }
  0x16   : > { %p968_p0 = pnand %p967_p13, %p966_p12 }
  0x18   : > { %p969_p3 = pneg %p968_p0 }
  0x1a   : > { %p974_p7 = pnand %p972_p5, %p969_p3 }
  0x1c   : > { %977 = shalt.err (!%p974_p7)
}
  0x1d   : > { %s978_s15 = scalar_lea.vmem %s1188_s28, 384  ;;  %p986_p2 = scmp.lt.s32.totalorder %s1188_s28, %s1188_s28 }
  0x1e   : > { %p979_p9 = scmp.ne.s32.totalorder %s1188_s28, %s978_s15  ;;  %p987_p6 = scmp.lt.s32.totalorder %s978_s15, %s978_s15 }
  0x20   : > { %p981_p10 = pnand %p979_p9, %p967_p13  ;;  %p988_p4 = por %p987_p6, %p986_p2 }
  0x22   : > { %p982_p1 = pneg %p981_p10 }
  0x24   : > { %p989_p8 = pnand %p988_p4, %p982_p1 }
  0x26   : > { %992 = shalt.err (!%p989_p8)
}
  0x27   : > { %s1096_s16 = smov 128   ;;  %s1097_s17 = smov 8  }
  0x28   : > { %873 = dma.hbm_to_vmem [thread:$0]  (!%p1195_p11), %s1384_s4, 384, %s1188_s28, [#allocation6], %s1096_s16, %s1096_s16, %s1097_s17  }
  0x29   : > { %p79_p2 = scmp.eq.s32.totalorder %s78_s7, 0  ;;  %p88_p1 = scmp.ne.s32.totalorder %s1089_s20, %s1085_s19 }
  0x2a   : > { %p89_p4 = scmp.eq.s32.totalorder %s1093_s21, 0  ;;  %p883_p6 = scmp.lt.s32.totalorder %s1093_s21, 2 }
  0x2b   : > { %s1231_s8 = scalar_select %p79_p2, %s1089_s20, %s81_s6  }
  0x2c   : > { %p90_p8 = por %p89_p4, %p88_p1  ;;  %p1393_p10 = scmp.eq.s32.totalorder %s1165_s22, 1 }
  0x2d   : > { %s220_s10 = sand.u32 1, %s1089_s20   ;;  %s839_s11 = sshll.u32 %s1093_s21, 7 }
  0x2e   : > { %p1235_p12 = por %p1393_p10, %p88_p1  ;;  %s801_s12 = sshll.u32 %s220_s10, 3 }
  0x2f   : > { %s1244_s14 = scalar_lea.hbm %s1382_s2, %s839_s11  ;;  %s224_s28 = scalar_lea.vmem [#allocation2], %s801_s12 }
  0x30   : > { %s231_s6 = sshll.u32 %s224_s28, 4  ;;  %p1246_p11 = pnand %p883_p6, %p90_p8  ;;  %s1250_s6 = int_to_ptr.vmem [resolvable:$true] %s231_s6 }
  0x31   : > { %s1252_s15 = scalar_lea.sflag [#allocation3], %s220_s10  ;;  %s993_s16 = scalar_lea.hbm %s1244_s14, 128 }
  0x32   : > { %p994_p13 = scmp.ne.s32.totalorder %s1244_s14, %s993_s16  ;;  %p995_p0 = pneg %p1246_p11 }
  0x33   : > { %s998_s27 = scalar_lea.hbm %s1382_s2, 256  ;;  %p999_p7 = scmp.lt.u32.totalorder %s1244_s14, %s1382_s2 }
  0x34   : > { %p996_p3 = pnand %p995_p0, %p994_p13  ;;  %p1000_p9 = scmp.lt.u32.totalorder %s998_s27, %s993_s16 }
  0x35   : > { %p1002_p1 = scmp.lt.u32.totalorder %s993_s16, %s1244_s14 }
  0x36   : > { %p997_p5 = pneg %p996_p3  ;;  %p1001_p2 = por %p1000_p9, %p999_p7 }
  0x38   : > { %p1003_p4 = por %p1002_p1, %p1001_p2 }
  0x3a   : > { %p1004_p6 = pnand %p1003_p4, %p997_p5 }
  0x3c   : > { %1007 = shalt.err (!%p1004_p6)
}
  0x3d   : > { %s1008_s10 = scalar_lea.vmem %s1250_s6, 128  ;;  %s1098_s29 = smov [#allocation2]  }
  0x3e   : > { %p1009_p8 = scmp.ne.s32.totalorder %s1250_s6, %s1008_s10  ;;  %s1013_s13 = sshll.u32 %s1098_s29, 4  ;;  %s1014_s13 = int_to_ptr.vmem [resolvable:$false] %s1013_s13 }
  0x3f   : > { %s1015_s28 = scalar_lea.vmem %s1014_s13, 256  ;;  %p1016_p3 = scmp.lt.s32.totalorder %s1250_s6, %s1014_s13 }
  0x40   : > { %p1011_p10 = pnand %p1009_p8, %p995_p0  ;;  %p1017_p7 = scmp.lt.s32.totalorder %s1015_s28, %s1008_s10 }
  0x42   : > { %p1012_p13 = pneg %p1011_p10  ;;  %p1018_p9 = por %p1017_p7, %p1016_p3 }
  0x44   : > { %p1019_p2 = pnand %p1018_p9, %p1012_p13 }
  0x46   : > { %1022 = shalt.err (!%p1019_p2)
}
  0x47   : > { %s1099_s16 = smov 64   ;;  %s1100_s17 = smov 4  }
  0x48   : > { %877 = dma.hbm_to_vmem [thread:$0]  (!%p1246_p11), %s1244_s14, 128, %s1250_s6, %s1252_s15, %s1099_s16, %s1099_s16, %s1100_s17  }
  0x49   : > { %p1396_p0 = scmp.ne.s32.totalorder %s1391_s26, 0 }
  0x4a   : > { %s1283_s23 = sand.u32 (!%p1396_p0), 1, %s1085_s19   ;;  %p1397_p5 = scmp.ne.s32.totalorder (!%p1396_p0), %s1389_s24, 0 }
  0x4b   : > { %243 = sbr.rel (%p1396_p0) target bundleno = 691 (0x2b3), region = 40  ;;  %s805_s27 = sshll.u32 (!%p1396_p0), %s1283_s23, 3 }
  0x4c   : > { %s246_s11 = scalar_lea.sflag (!%p1396_p0), [#allocation3], %s1283_s23  ;;  %s1287_s12 = scalar_lea.vmem (!%p1396_p0), [#allocation2], %s805_s27 }
  0x52   : > { %1068 = dma.done.wait (%p1397_p5), %s246_s11, 128  }
  0x53   : > { %1070 = vsyncadd (%p1397_p5), %s246_s11, 4294967168  ;;  %p1398_p11 = scmp.eq.s32.totalorder %s1165_s22, 0 }
  0x55   : > { %1072 = dma.done.wait (%p1398_p11), [#allocation6], 384   ;;  %p1399_p1 = pmov %p1398_p11 }
  0x56   : > { %s808_s26 = sshll.u32 %s1165_s22, 1  ;;  %v1101_v0 = vmov 1   ;;  %v1102_v1 = vmov 0.0   ;;  %v1103_v2 = vmov 0   ;;  %vm1104_vm0 = vmmov 0   ;;  %v948_v4 = vld [vmem:[%s1383_s3] sm:$0xff]  }
  0x57   : > { %1074 = vsyncadd (%p1399_p1), [#allocation6], 4294966912  ;;  %936 = vset.pattern.permute.xlu1 %v1101_v0  ;;  %p291_p4 = scmp.lt.s32.totalorder %s808_s26, 3  ;;  %850 = vmatprep.subr.bf16.mxu0 %v1102_v1  ;;  %v949_v6 = vld [vmem:[%s1383_s3 + $0x8] sm:$0xff]   ;;  %v950_v7 = vld [vmem:[%s1383_s3 + $0x10] sm:$0xff]   ;;  %v1105_v8 = vmov 2  }
  0x58   : > { %935 = vset.pattern.permute.xlu0 %v1103_v2  ;;  %858 = vmatprep.mubr.msk.bf16.mxu0 %vm1104_vm0, %v1102_v1  ;;  %v951_v9 = vld [vmem:[%s1383_s3 + $0x18] sm:$0xff]   ;;  %v1106_v10 = vmov 3   ;;  %vm363_vm1 = vcmask 523264   ;;  %v1107_v12 = vmov 4   ;;  %v1108_v13 = vmov 5   ;;  %s840_s6 = sshll.u32 %s1165_s22, 8 }
  0x59   : > { %s1407_s26 = smov (!%p291_p4, %s808_s26), 3  ;;  %851 = vmatpush3.bf16.msra.mxu0 %v948_v4  ;;  %v1109_v14 = vmov 7   ;;  %v1110_v15 = vmov 6   ;;  %v823_v21 = vld [vmem:[#allocation5 + $0x1] ss:$0 sm:$0xff]  ;;  %s1334_s13 = scalar_lea.hbm %s1385_s5, %s840_s6 }
  0x5a   : > { %s811_s24 = sshll.u32 %s1407_s26, 3  ;;  %s809_s15 = sshll.u32 %s1407_s26, 2  ;;  %852 = vmatprep.subr.bf16.mxu0 %v1102_v1  ;;  %v822_v23 = vld [vmem:[#allocation5] ss:$0 sm:$0xff]  ;;  %v824_v26 = vld [vmem:[#allocation5 + $0x2] ss:$0 sm:$0xff] }
  0x5b   : > { %s300_s7 = scalar_lea.vmem %s1381_s1, %s811_s24  ;;  %s294_s27 = scalar_lea.vmem %s1380_s0, %s809_s15  ;;  %v825_v33 = vld [vmem:[#allocation5 + $0x3] ss:$0 sm:$0xff]  ;;  %v826_v40 = vld [vmem:[#allocation5 + $0x4] ss:$0 sm:$0xff]  ;;  %v827_v46 = vld [vmem:[#allocation5 + $0x5] ss:$0 sm:$0xff] }
  0x5c   : > { %v305_v3 = vld [vmem:[%s300_s7] sm:$0xff]  ;;  %v306_v5 = vld [vmem:[%s300_s7 + $0x8] sm:$0xff]  ;;  %v828_v53 = vld [vmem:[#allocation5 + $0x6] ss:$0 sm:$0xff]  ;;  %s677_s28 = scalar_lea.sflag [#allocation4], %s1283_s23  ;;  %s1111_s22 = smov [#allocation7]  }
  0x5d   : > { %475 = vperm.xlu1 %936, %v305_v3   ;;  %460 = vperm.xlu0 %935, %v305_v3   ;;  %v952_v11 = vld [vmem:[%s294_s27] sm:$0xff]   ;;  %v829_v59 = vld [vmem:[#allocation5 + $0xc] ss:$0 sm:$0xff]  ;;  %s1027_s17 = sshll.u32 %s1111_s22, 4  ;;  %s1028_s17 = int_to_ptr.vmem [resolvable:$false] %s1027_s17 }
  0x5e   : > { %853 = vmatpush3.bf16.msra.mxu0 %v949_v6  ;;  %s1029_s27 = scalar_lea.vmem %s1028_s17, 512 }
  0x5f   : > { %854 = vmatprep.subr.bf16.mxu0 %v1102_v1 }
  0x61   : > { %479 = vperm.xlu1 %936, %v306_v5   ;;  %464 = vperm.xlu0 %935, %v306_v5  }
  0x62   : > { %855 = vmatpush3.bf16.msra.mxu0 %v950_v7 }
  0x63   : > { %856 = vmatprep.subr.bf16.mxu0 %v1102_v1 }
  0x65   : > { %938 = vset.pattern.permute.xlu1 %v1105_v8  ;;  %937 = vset.pattern.permute.xlu0 %v1105_v8  ;;  %v819_v8 = vld [vmem:[#allocation5 + $0x9] ss:$0 sm:$0xff] }
  0x66   : > { %496 = vperm.xlu1 %938, %v306_v5   ;;  %492 = vperm.xlu0 %937, %v305_v3  }
  0x67   : > { %857 = vmatpush3.bf16.msra.mxu0 %v951_v9 }
  0x6a   : > { %939 = vset.pattern.permute.xlu1 %v1106_v10  ;;  %940 = vset.pattern.permute.xlu0 %v1106_v10 }
  0x6b   : > { %509 = vperm.xlu1 %939, %v305_v3   ;;  %513 = vperm.xlu0 %940, %v306_v5  }
  0x6c   : > { %859 = vmatmul.mubr.msk.bf16.vlgmr.msra.gmra.mrb[0].mxu0 %vm363_vm1, %v952_v11 }
  0x6f   : > { %941 = vset.pattern.permute.xlu1 %v1107_v12  ;;  %942 = vset.pattern.permute.xlu0 %v1108_v13 }
  0x70   : > { %526 = vperm.xlu1 %941, %v305_v3   ;;  %543 = vperm.xlu0 %942, %v305_v3  }
  0x74   : > { %530 = vperm.xlu1 %941, %v306_v5   ;;  %945 = vset.pattern.permute.xlu0 %v1109_v14 }
  0x75   : > { %325 = vperm.xlu0 %945, %v306_v5  }
  0x78   : > { %943 = vset.pattern.permute.xlu1 %v1108_v13 }
  0x79   : > { %547 = vperm.xlu1 %943, %v306_v5   ;;  %947 = vset.pattern.permute.xlu0 %v1110_v15 }
  0x7d   : > { %944 = vset.pattern.permute.xlu1 %v1109_v14 }
  0x7e   : > { %320 = vperm.xlu1 %944, %v305_v3  }
  0x82   : > { %946 = vset.pattern.permute.xlu1 %v1110_v15 }
  0x83   : > { %560 = vperm.xlu1 %946, %v305_v3   ;;  %v812_v3 = vld [vmem:[#allocation5 + $0x8] ss:$0 sm:$0xff] }
  0x87   : > { %564 = vperm.xlu1 %946, %v306_v5  }
  0xdc   : > { %v476_v16 = vpop.permute.xlu1 %475  ;;  %v461_v18 = vpop.permute.xlu0 %460 }
  0xdd   : > { %v486_v24 = vmul.f32 %v823_v21, %v476_v16  ;;  %v471_v25 = vmul.f32 %v822_v23, %v461_v18 }
  0xdf   : > { %v488_v30 = vadd.f32 %v486_v24, %v471_v25 }
  0xe0   : > { %v480_v17 = vpop.permute.xlu1 %479  ;;  %v465_v20 = vpop.permute.xlu0 %464 }
  0xe1   : > { %v487_v29 = vmul.f32 %v823_v21, %v480_v17  ;;  %v472_v31 = vmul.f32 %v822_v23, %v465_v20 }
  0xe3   : > { %v489_v38 = vadd.f32 %v487_v29, %v472_v31 }
  0xe5   : > { %v497_v19 = vpop.permute.xlu1 %496  ;;  %v493_v27 = vpop.permute.xlu0 %492 }
  0xe6   : > { %v503_v32 = vmul.f32 %v824_v26, %v493_v27  ;;  %v504_v36 = vmul.f32 %v824_v26, %v497_v19 }
  0xe8   : > { %v505_v39 = vadd.f32 %v503_v32, %v488_v30  ;;  %v506_v44 = vadd.f32 %v504_v36, %v489_v38 }
  0xea   : > { %v510_v22 = vpop.permute.xlu1 %509  ;;  %v514_v35 = vpop.permute.xlu0 %513 }
  0xeb   : > { %v520_v37 = vmul.f32 %v825_v33, %v510_v22  ;;  %v521_v45 = vmul.f32 %v825_v33, %v514_v35 }
  0xed   : > { %v522_v43 = vadd.f32 %v520_v37, %v505_v39  ;;  %v523_v49 = vadd.f32 %v521_v45, %v506_v44 }
  0xef   : > { %v527_v28 = vpop.permute.xlu1 %526  ;;  %v544_v47 = vpop.permute.xlu0 %543 }
  0xf0   : > { %v537_v42 = vmul.f32 %v826_v40, %v527_v28  ;;  %v554_v52 = vmul.f32 %v827_v46, %v544_v47 }
  0xf2   : > { %v539_v51 = vadd.f32 %v537_v42, %v522_v43 }
  0xf3   : > { %v531_v34 = vpop.permute.xlu1 %530 }
  0xf4   : > { %v538_v48 = vmul.f32 %v826_v40, %v531_v34  ;;  %v556_v56 = vadd.f32 %v554_v52, %v539_v51  ;;  %v326_v4 = vpop.permute.xlu0 %325 }
  0xf5   : > { %v333_v6 = vmul.f32 %v812_v3, %v326_v4  ;;  %v821_v4 = vld [vmem:[#allocation5 + $0xb] ss:$0 sm:$0xff] }
  0xf6   : > { %v540_v55 = vadd.f32 %v538_v48, %v523_v49 }
  0xf8   : > { %v548_v41 = vpop.permute.xlu1 %547 }
  0xf9   : > { %v555_v54 = vmul.f32 %v827_v46, %v548_v41 }
  0xfb   : > { %v557_v61 = vadd.f32 %v555_v54, %v540_v55 }
  0xfd   : > { %v321_v50 = vpop.permute.xlu1 %320 }
  0xfe   : > { %v332_v5 = vmul.f32 %v812_v3, %v321_v50 }
 0x102   : > { %v561_v57 = vpop.permute.xlu1 %560 }
 0x103   : > { %v571_v58 = vmul.f32 %v828_v53, %v561_v57  ;;  %v820_v57 = vld [vmem:[#allocation5 + $0xa] ss:$0 sm:$0xff] }
 0x105   : > { %v573_v60 = vadd.f32 %v571_v58, %v556_v56 }
 0x106   : > { %v565_v62 = vpop.permute.xlu1 %564 }
 0x107   : > { %v572_v63 = vmul.f32 %v828_v53, %v565_v62  ;;  %v1316_v0 = vadd.f32 %v829_v59, %v573_v60 }
 0x109   : > { %v574_v1 = vadd.f32 %v572_v63, %v557_v61  ;;  %584 = vadd.xlane.f32.xlu0 %v1316_v0  ;;  %v590_v19 = vmul.f32 %v1316_v0, %v1316_v0  ;;  %v830_v61 = vld [vmem:[#allocation5 + $0xd] ss:$0 sm:$0xff] }
 0x10b   : > { %v1319_v2 = vadd.f32 %v829_v59, %v574_v1 }
 0x10d   : > { %586 = vadd.xlane.f32.xlu0 %v1319_v2  ;;  %v591_v18 = vmul.f32 %v1319_v2, %v1319_v2 }
 0x13f   : > { %v401_v7 = vpop.f32.mrb[0].mxu0 }
 0x140   : > { %v402_v9 = vadd.f32 %v401_v7, %v332_v5  ;;  %v860_v10 = vpop.f32.mrb[1].mxu0  ;;  %v831_v5 = vld [vmem:[#allocation5 + $0xe] ss:$0 sm:$0xff] }
 0x141   : > { %v404_v11 = vpop.f32.mrb[2].mxu0 }
 0x142   : > { %v413_v12 = vadd.f32 %v819_v8, %v402_v9  ;;  %v405_v13 = vadd.f32 %v404_v11, %v333_v6  ;;  %v861_v14 = vpop.f32.mrb[3].mxu0  ;;  %v842_v6 = vld [vmem:[%s1287_s12] sm:$0xff]   ;;  %s807_s12 = sshll.u32 %s1283_s23, 4 }
 0x143   : > { %s289_s7 = scalar_lea.vmem [#allocation7], %s807_s12 }
 0x144   : > { %v414_v15 = vadd.f32 %v819_v8, %v405_v13  ;;  %417 = vadd.xlane.f32.xlu0 %v413_v12  ;;  %v424_v17 = vmul.f32 %v413_v12, %v413_v12  ;;  %s690_s15 = sshll.u32 %s289_s7, 4  ;;  %s1336_s15 = int_to_ptr.vmem [resolvable:$true] %s690_s15 }
 0x145   : > { %s1023_s16 = scalar_lea.vmem %s1336_s15, 256  ;;  %p1030_p13 = scmp.lt.s32.totalorder %s1336_s15, %s1028_s17 }
 0x146   : > { %419 = vadd.xlane.f32.xlu1 %v414_v15  ;;  %v425_v16 = vmul.f32 %v414_v15, %v414_v15  ;;  %p1024_p6 = scmp.ne.s32.totalorder %s1336_s15, %s1023_s16  ;;  %p1031_p3 = scmp.lt.s32.totalorder %s1029_s27, %s1023_s16 }
 0x148   : > { %428 = vadd.xlane.f32.xlu0 %v425_v16  ;;  %v843_v16 = vunpack.c.l.bf16 %v842_v6  ;;  %p1025_p8 = pnand %p1024_p6, %p1235_p12  ;;  %p1032_p7 = por %p1031_p3, %p1030_p13 }
 0x14a   : > { %426 = vadd.xlane.f32.xlu1 %v424_v17  ;;  %p1026_p10 = pneg %p1025_p8 }
 0x14c   : > { %594 = vadd.xlane.f32.xlu0 %v591_v18  ;;  %p1033_p9 = pnand %p1032_p7, %p1026_p10 }
 0x14e   : > { %592 = vadd.xlane.f32.xlu1 %v590_v19 }
 0x196   : > { %v585_v20 = vpop.xlane.xlu0 %584 }
 0x197   : > { %v588_v34 = vmul.f32 0.0078125, %v585_v20 }
 0x199   : > { %v598_v40 = vmul.f32 %v588_v34, %v588_v34  ;;  %v604_v62 = vsub.f32 %v1316_v0, %v588_v34 }
 0x19a   : > { %v587_v21 = vpop.xlane.xlu0 %586 }
 0x19b   : > { %v589_v30 = vmul.f32 0.0078125, %v587_v21 }
 0x19d   : > { %v599_v36 = vmul.f32 %v589_v30, %v589_v30  ;;  %v605_v58 = vsub.f32 %v1319_v2, %v589_v30 }
 0x1d1   : > { %v418_v22 = vpop.xlane.xlu0 %417 }
 0x1d2   : > { %v422_v24 = vmul.f32 0.0078125, %v418_v22 }
 0x1d3   : > { %v420_v23 = vpop.xlane.xlu1 %419 }
 0x1d4   : > { %v423_v25 = vmul.f32 0.0078125, %v420_v23  ;;  %v432_v31 = vmul.f32 %v422_v24, %v422_v24  ;;  %v438_v54 = vsub.f32 %v413_v12, %v422_v24  ;;  %v844_v12 = vunpack.c.h.bf16 %v842_v6 }
 0x1d5   : > { %v429_v26 = vpop.xlane.xlu0 %428 }
 0x1d6   : > { %v433_v27 = vmul.f32 %v423_v25, %v423_v25  ;;  %v431_v28 = vmul.f32 0.0078125, %v429_v26  ;;  %v439_v52 = vsub.f32 %v414_v15, %v423_v25 }
 0x1d7   : > { %v427_v29 = vpop.xlane.xlu1 %426 }
 0x1d8   : > { %v435_v32 = vsub.f32 %v431_v28, %v433_v27  ;;  %v430_v33 = vmul.f32 0.0078125, %v427_v29 }
 0x1d9   : > { %v595_v35 = vpop.xlane.xlu0 %594 }
 0x1da   : > { %v437_v37 = vmax.f32 %v435_v32, 0.0  ;;  %v434_v38 = vsub.f32 %v430_v33, %v432_v31  ;;  %v597_v39 = vmul.f32 0.0078125, %v595_v35 }
 0x1db   : > { %v593_v41 = vpop.xlane.xlu1 %592 }
 0x1dc   : > { %v441_v42 = vadd.f32 1e-12, %v437_v37  ;;  %v436_v43 = vmax.f32 %v434_v38, 0.0  ;;  %v601_v44 = vsub.f32 %v597_v39, %v599_v36  ;;  %v596_v45 = vmul.f32 0.0078125, %v593_v41  ;;  %v832_v39 = vld [vmem:[#allocation5 + $0xf] ss:$0 sm:$0xff] }
 0x1de   : > { %953 = vrsqrt.f32 %v441_v42  ;;  %v440_v46 = vadd.f32 1e-12, %v436_v43  ;;  %v603_v47 = vmax.f32 %v601_v44, 0.0  ;;  %v600_v48 = vsub.f32 %v596_v45, %v598_v40  ;;  %v833_v43 = vld [vmem:[#allocation5 + $0x10] ss:$0 sm:$0xff] }
 0x1e0   : > { %955 = vrsqrt.f32 %v440_v46  ;;  %v607_v49 = vadd.f32 1e-12, %v603_v47  ;;  %v602_v50 = vmax.f32 %v600_v48, 0.0 }
 0x1e2   : > { %957 = vrsqrt.f32 %v607_v49  ;;  %v606_v51 = vadd.f32 1e-12, %v602_v50 }
 0x1e4   : > { %959 = vrsqrt.f32 %v606_v51 }
 0x1e8   : > { %v954_v53 = vpop.eup %953 }
 0x1e9   : > { %v445_v55 = vmul.f32 %v954_v53, %v439_v52 }
 0x1ea   : > { %v956_v56 = vpop.eup %955 }
 0x1eb   : > { %v444_v59 = vmul.f32 %v956_v56, %v438_v54  ;;  %v451_v63 = vmul.f32 %v820_v57, %v445_v55 }
 0x1ec   : > { %v958_v60 = vpop.eup %957 }
 0x1ed   : > { %v611_v1 = vmul.f32 %v958_v60, %v605_v58  ;;  %v450_v8 = vmul.f32 %v820_v57, %v444_v59  ;;  %v457_v10 = vadd.f32 %v821_v4, %v451_v63 }
 0x1ee   : > { %v960_v3 = vpop.eup %959 }
 0x1ef   : > { %v617_v7 = vmul.f32 %v830_v61, %v611_v1  ;;  %v610_v9 = vmul.f32 %v960_v3, %v604_v62  ;;  %v456_v2 = vadd.f32 %v821_v4, %v450_v8 }
 0x1f1   : > { %v623_v11 = vadd.f32 %v831_v5, %v617_v7  ;;  %v616_v13 = vmul.f32 %v830_v61, %v610_v9 }
 0x1f3   : > { %v625_v14 = vadd.f32 %v623_v11, %v457_v10  ;;  %v622_v15 = vadd.f32 %v831_v5, %v616_v13 }
 0x1f5   : > { %v631_v17 = vadd.f32 %v844_v12, %v625_v14  ;;  %v624_v18 = vadd.f32 %v622_v15, %v456_v2 }
 0x1f7   : > { %636 = vadd.xlane.f32.xlu0 %v631_v17  ;;  %v630_v0 = vadd.f32 %v843_v16, %v624_v18  ;;  %v641_v19 = vmul.f32 %v631_v17, %v631_v17 }
 0x1f9   : > { %634 = vadd.xlane.f32.xlu1 %v630_v0  ;;  %v640_v20 = vmul.f32 %v630_v0, %v630_v0 }
 0x1fb   : > { %644 = vadd.xlane.f32.xlu0 %v641_v19 }
 0x1fd   : > { %642 = vadd.xlane.f32.xlu1 %v640_v20 }
 0x284   : > { %v637_v21 = vpop.xlane.xlu0 %636 }
 0x285   : > { %v639_v22 = vmul.f32 0.0078125, %v637_v21 }
 0x286   : > { %v635_v23 = vpop.xlane.xlu1 %634 }
 0x287   : > { %v638_v24 = vmul.f32 0.0078125, %v635_v23  ;;  %v649_v26 = vmul.f32 %v639_v22, %v639_v22  ;;  %v655_v37 = vsub.f32 %v631_v17, %v639_v22 }
 0x288   : > { %v645_v25 = vpop.xlane.xlu0 %644 }
 0x289   : > { %v647_v27 = vmul.f32 0.0078125, %v645_v25  ;;  %v648_v29 = vmul.f32 %v638_v24, %v638_v24  ;;  %v654_v40 = vsub.f32 %v630_v0, %v638_v24 }
 0x28a   : > { %v643_v28 = vpop.xlane.xlu1 %642 }
 0x28b   : > { %v651_v30 = vsub.f32 %v647_v27, %v649_v26  ;;  %v646_v31 = vmul.f32 0.0078125, %v643_v28 }
 0x28d   : > { %v653_v32 = vmax.f32 %v651_v30, 0.0  ;;  %v650_v33 = vsub.f32 %v646_v31, %v648_v29 }
 0x28f   : > { %v657_v34 = vadd.f32 1e-12, %v653_v32  ;;  %v652_v35 = vmax.f32 %v650_v33, 0.0 }
 0x291   : > { %961 = vrsqrt.f32 %v657_v34  ;;  %v656_v36 = vadd.f32 1e-12, %v652_v35 }
 0x293   : > { %963 = vrsqrt.f32 %v656_v36 }
 0x29b   : > { %v962_v38 = vpop.eup %961 }
 0x29c   : > { %v661_v41 = vmul.f32 %v962_v38, %v655_v37 }
 0x29d   : > { %v964_v42 = vpop.eup %963 }
 0x29e   : > { %v667_v44 = vmul.f32 %v832_v39, %v661_v41  ;;  %v660_v45 = vmul.f32 %v964_v42, %v654_v40 }
 0x2a0   : > { %v673_v46 = vadd.f32 %v833_v43, %v667_v44  ;;  %v666_v47 = vmul.f32 %v832_v39, %v660_v45 }
 0x2a2   : > { %v672_v48 = vadd.f32 %v833_v43, %v666_v47  ;;  %675 = vst [vmem:[%s289_s7 + $0x8] sm:$0xff] %v673_v46 }
 0x2a4   : > { %674 = vst [vmem:[%s289_s7] sm:$0xff] %v672_v48 }
 0x2a5   : > { %1036 = shalt.err (!%p1033_p9)
}
 0x2a6   : > { %s1037_s11 = scalar_lea.hbm %s1334_s13, 256  ;;  %s1041_s14 = scalar_lea.hbm %s1385_s5, 512 }
 0x2a7   : > { %p1038_p2 = scmp.ne.s32.totalorder %s1334_s13, %s1037_s11  ;;  %p1042_p11 = scmp.lt.u32.totalorder %s1334_s13, %s1385_s5 }
 0x2a8   : > { %p1043_p1 = scmp.lt.u32.totalorder %s1041_s14, %s1037_s11  ;;  %p1045_p6 = scmp.lt.u32.totalorder %s1037_s11, %s1334_s13 }
 0x2a9   : > { %p1039_p0 = pnand %p1038_p2, %p1235_p12 }
 0x2aa   : > { %p1044_p4 = por %p1043_p1, %p1042_p11 }
 0x2ab   : > { %p1040_p5 = pneg %p1039_p0 }
 0x2ac   : > { %p1046_p8 = por %p1045_p6, %p1044_p4 }
 0x2ae   : > { %p1047_p10 = pnand %p1046_p8, %p1040_p5 }
 0x2b0   : > { %1050 = shalt.err (!%p1047_p10)
}
 0x2b1   : > { %s1112_s7 = smov 128   ;;  %s1113_s10 = smov 8  }
 0x2b2   : > { %868 = dma.vmem_to_hbm [thread:$0]  (%p1235_p12), %s1336_s15, 256, %s1334_s13, %s677_s28, %s1112_s7, %s1112_s7, %s1113_s10  }
 0x2b3 PF: > { %s705_s29 = sand.u32 1, %s1081_s18   ;;  %p1400_p13 = scmp.ne.s32.totalorder %s1390_s25, 0 }
 0x2b4   : > { %p1401_p3 = scmp.ge.s32.totalorder %s1093_s21, 2  ;;  %s706_s16 = scalar_lea.sflag [#allocation4], %s705_s29 }
 0x2b6   : > { %p879_p7 = pnand %p1401_p3, %p1400_p13 }
 0x2b8   : > { %1076 = dma.done.wait (!%p879_p7), %s706_s16, 256  }
 0x2b9   : > { %1078 = vsyncadd (!%p879_p7), %s706_s16, 4294967040  ;;  %p19_p9 = scmp.ge.s32.totalorder %s1200_s30, 4   ;;  %s1402_s18 = smov %s1085_s19 }
 0x2ba   : > { %s1403_s19 = smov %s1089_s20  ;;  %s1404_s20 = smov %s1231_s8 }
 0x2bb   : > { %s1405_s21 = smov %s1200_s30  ;;  %21 = sbr.rel (!%p19_p9) target bundleno = 6 (0x6), region = 95 }
 0x2c2   :  { %711 = vsyncpa [#allocation3], 1 }
 0x2c3   :  { %713 = vsyncpa [#allocation3 + $0x1], 1 }
 0x2c4   :  { %714 = vsyncpa [#allocation6], 1 }
 0x2c5   :  { %715 = vsyncpa [#allocation4], 1 }
 0x2c6   :  { %717 = vsyncpa [#allocation4 + $0x1], 1 }

// kernel: tpu_custom_call.1
= control target key start
LH: loop header
LB: loop body
LE: loop exit
PB: predicated region body
PF: predicated region fallthrough
CT: control target
= control target key end

     0   :  { %10 = vsyncpa [#allocation3], 0  ;;  %s1380_s0 = inlined_call_operand.vmem [shape: bf16[32,64], index: 0, kind: input, shape index: {}]   ;;  %s1381_s1 = inlined_call_operand.vmem [shape: f32[32,8], index: 1, kind: input, shape index: {}]   ;;  %s1382_s2 = inlined_call_operand.hbm [shape: bf16[32,128], index: 2, kind: input, shape index: {}]   ;;  %s1383_s3 = inlined_call_operand.vmem [shape: bf16[64,128], index: 3, kind: input, shape index: {}]   ;;  %s1384_s4 = inlined_call_operand.hbm [shape: f32[24,128], index: 4, kind: input, shape index: {}]   ;;  %s1385_s5 = inlined_call_operand.hbm [shape: f32[32,128], index: 5, kind: output, shape index: {}]  }
   0x1   :  { %12 = vsyncpa [#allocation3 + $0x1], 0 }
   0x2   :  { %13 = vsyncpa [#allocation6], 0 }
   0x3   :  { %14 = vsyncpa [#allocation4], 0 }
   0x4   :  { %16 = vsyncpa [#allocation4 + $0x1], 0  ;;  %s1144_s18 = smov 0   ;;  %s1146_s19 = smov 0  }
   0x5   :  { %s1148_s20 = smov 0   ;;  %s1150_s21 = smov 0  }
   0x6 LB: > { %s1165_s22 = sadd.s32 4294967295, %s1093_s21   ;;  %s797_s23 = sadd.s32 4294967294, %s1093_s21   ;;  %s1093_s21 = sphi %s1150_s21, %s1405_s21   ;;  %s1089_s20 = sphi %s1148_s20, %s1404_s20   ;;  %s1085_s19 = sphi %s1146_s19, %s1403_s19   ;;  %s1081_s18 = sphi %s1144_s18, %s1402_s18  }
   0x7   : > { %p94_p0 = scmp.ne.s32.totalorder %s1085_s19, %s1081_s18  ;;  %p1386_p1 = scmp.eq.s32.totalorder %s1165_s22, 0 }
   0x8   : > { %p166_p3 = scmp.eq.s32.totalorder %s797_s23, 1  ;;  %p798_p5 = scmp.ge.s32.totalorder %s1093_s21, 1 }
   0x9   : > { %p1174_p4 = por %p1386_p1, %p94_p0  ;;  %p173_p7 = scmp.lt.s32.totalorder %s1093_s21, 3 }
   0xa   : > { %p1179_p6 = por %p166_p3, %p94_p0  ;;  %s1095_s27 = smov [#allocation5]  }
   0xb   : > { %s1389_s24 = scalar_select %p1174_p4, 1, 0 }
   0xc   : > { %s1390_s25 = scalar_select %p1179_p6, 1, 0 }
   0xd   : > { %p1184_p8 = pnand %p798_p5, %p173_p7  ;;  %s188_s28 = sshll.u32 %s1095_s27, 4  ;;  %s1188_s28 = int_to_ptr.vmem [resolvable:$true] %s188_s28 }
   0xe   : > { %s1200_s30 = sadd.s32 1, %s1093_s21   ;;  %s81_s6 = sadd.s32 1, %s1089_s20 }
   0xf   : > { %s1391_s26 = scalar_select %p1184_p8, 1, 0 }
  0x10   : > { %p870_p9 = pneg %p1184_p8  ;;  %s78_s7 = ssub.s32 %s1093_s21, %s1200_s30 }
  0x11   : > { %s965_s10 = scalar_lea.hbm %s1384_s4, 384 }
  0x12   : > { %p1195_p11 = pnand %p870_p9, %p1386_p1  ;;  %p966_p12 = scmp.ne.s32.totalorder %s1384_s4, %s965_s10 }
  0x13   : > { %p972_p5 = scmp.lt.u32.totalorder %s965_s10, %s1384_s4 }
  0x14   : > { %p967_p13 = pneg %p1195_p11 }
  0x16   : > { %p968_p0 = pnand %p967_p13, %p966_p12 }
  0x18   : > { %p969_p3 = pneg %p968_p0 }
  0x1a   : > { %p974_p7 = pnand %p972_p5, %p969_p3 }
  0x1c   : > { %977 = shalt.err (!%p974_p7)
}
  0x1d   : > { %s978_s15 = scalar_lea.vmem %s1188_s28, 384  ;;  %p986_p2 = scmp.lt.s32.totalorder %s1188_s28, %s1188_s28 }
  0x1e   : > { %p979_p9 = scmp.ne.s32.totalorder %s1188_s28, %s978_s15  ;;  %p987_p6 = scmp.lt.s32.totalorder %s978_s15, %s978_s15 }
  0x20   : > { %p981_p10 = pnand %p979_p9, %p967_p13  ;;  %p988_p4 = por %p987_p6, %p986_p2 }
  0x22   : > { %p982_p1 = pneg %p981_p10 }
  0x24   : > { %p989_p8 = pnand %p988_p4, %p982_p1 }
  0x26   : > { %992 = shalt.err (!%p989_p8)
}
  0x27   : > { %s1096_s16 = smov 128   ;;  %s1097_s17 = smov 8  }
  0x28   : > { %873 = dma.hbm_to_vmem [thread:$0]  (!%p1195_p11), %s1384_s4, 384, %s1188_s28, [#allocation6], %s1096_s16, %s1096_s16, %s1097_s17  }
  0x29   : > { %p79_p2 = scmp.eq.s32.totalorder %s78_s7, 0  ;;  %p88_p1 = scmp.ne.s32.totalorder %s1089_s20, %s1085_s19 }
  0x2a   : > { %p89_p4 = scmp.eq.s32.totalorder %s1093_s21, 0  ;;  %p883_p6 = scmp.lt.s32.totalorder %s1093_s21, 2 }
  0x2b   : > { %s1231_s8 = scalar_select %p79_p2, %s1089_s20, %s81_s6  }
  0x2c   : > { %p90_p8 = por %p89_p4, %p88_p1  ;;  %p1393_p10 = scmp.eq.s32.totalorder %s1165_s22, 1 }
  0x2d   : > { %s220_s10 = sand.u32 1, %s1089_s20   ;;  %s839_s11 = sshll.u32 %s1093_s21, 7 }
  0x2e   : > { %p1235_p12 = por %p1393_p10, %p88_p1  ;;  %s801_s12 = sshll.u32 %s220_s10, 3 }
  0x2f   : > { %s1244_s14 = scalar_lea.hbm %s1382_s2, %s839_s11  ;;  %s224_s28 = scalar_lea.vmem [#allocation2], %s801_s12 }
  0x30   : > { %s231_s6 = sshll.u32 %s224_s28, 4  ;;  %p1246_p11 = pnand %p883_p6, %p90_p8  ;;  %s1250_s6 = int_to_ptr.vmem [resolvable:$true] %s231_s6 }
  0x31   : > { %s1252_s15 = scalar_lea.sflag [#allocation3], %s220_s10  ;;  %s993_s16 = scalar_lea.hbm %s1244_s14, 128 }
  0x32   : > { %p994_p13 = scmp.ne.s32.totalorder %s1244_s14, %s993_s16  ;;  %p995_p0 = pneg %p1246_p11 }
  0x33   : > { %s998_s27 = scalar_lea.hbm %s1382_s2, 256  ;;  %p999_p7 = scmp.lt.u32.totalorder %s1244_s14, %s1382_s2 }
  0x34   : > { %p996_p3 = pnand %p995_p0, %p994_p13  ;;  %p1000_p9 = scmp.lt.u32.totalorder %s998_s27, %s993_s16 }
  0x35   : > { %p1002_p1 = scmp.lt.u32.totalorder %s993_s16, %s1244_s14 }
  0x36   : > { %p997_p5 = pneg %p996_p3  ;;  %p1001_p2 = por %p1000_p9, %p999_p7 }
  0x38   : > { %p1003_p4 = por %p1002_p1, %p1001_p2 }
  0x3a   : > { %p1004_p6 = pnand %p1003_p4, %p997_p5 }
  0x3c   : > { %1007 = shalt.err (!%p1004_p6)
}
  0x3d   : > { %s1008_s10 = scalar_lea.vmem %s1250_s6, 128  ;;  %s1098_s29 = smov [#allocation2]  }
  0x3e   : > { %p1009_p8 = scmp.ne.s32.totalorder %s1250_s6, %s1008_s10  ;;  %s1013_s13 = sshll.u32 %s1098_s29, 4  ;;  %s1014_s13 = int_to_ptr.vmem [resolvable:$false] %s1013_s13 }
  0x3f   : > { %s1015_s28 = scalar_lea.vmem %s1014_s13, 256  ;;  %p1016_p3 = scmp.lt.s32.totalorder %s1250_s6, %s1014_s13 }
  0x40   : > { %p1011_p10 = pnand %p1009_p8, %p995_p0  ;;  %p1017_p7 = scmp.lt.s32.totalorder %s1015_s28, %s1008_s10 }
  0x42   : > { %p1012_p13 = pneg %p1011_p10  ;;  %p1018_p9 = por %p1017_p7, %p1016_p3 }
  0x44   : > { %p1019_p2 = pnand %p1018_p9, %p1012_p13 }
  0x46   : > { %1022 = shalt.err (!%p1019_p2)
}
  0x47   : > { %s1099_s16 = smov 64   ;;  %s1100_s17 = smov 4  }
  0x48   : > { %877 = dma.hbm_to_vmem [thread:$0]  (!%p1246_p11), %s1244_s14, 128, %s1250_s6, %s1252_s15, %s1099_s16, %s1099_s16, %s1100_s17  }
  0x49   : > { %p1396_p0 = scmp.ne.s32.totalorder %s1391_s26, 0 }
  0x4a   : > { %s1283_s23 = sand.u32 (!%p1396_p0), 1, %s1085_s19   ;;  %p1397_p5 = scmp.ne.s32.totalorder (!%p1396_p0), %s1389_s24, 0 }
  0x4b   : > { %243 = sbr.rel (%p1396_p0) target bundleno = 691 (0x2b3), region = 40  ;;  %s805_s27 = sshll.u32 (!%p1396_p0), %s1283_s23, 3 }
  0x4c   : > { %s246_s11 = scalar_lea.sflag (!%p1396_p0), [#allocation3], %s1283_s23  ;;  %s1287_s12 = scalar_lea.vmem (!%p1396_p0), [#allocation2], %s805_s27 }
  0x52   : > { %1068 = dma.done.wait (%p1397_p5), %s246_s11, 128  }
  0x53   : > { %1070 = vsyncadd (%p1397_p5), %s246_s11, 4294967168  ;;  %p1398_p11 = scmp.eq.s32.totalorder %s1165_s22, 0 }
  0x55   : > { %1072 = dma.done.wait (%p1398_p11), [#allocation6], 384   ;;  %p1399_p1 = pmov %p1398_p11 }
  0x56   : > { %s808_s26 = sshll.u32 %s1165_s22, 1  ;;  %v1101_v0 = vmov 1   ;;  %v1102_v1 = vmov 0.0   ;;  %v1103_v2 = vmov 0   ;;  %vm1104_vm0 = vmmov 0   ;;  %v948_v4 = vld [vmem:[%s1383_s3] sm:$0xff]  }
  0x57   : > { %1074 = vsyncadd (%p1399_p1), [#allocation6], 4294966912  ;;  %936 = vset.pattern.permute.xlu1 %v1101_v0  ;;  %p291_p4 = scmp.lt.s32.totalorder %s808_s26, 3  ;;  %850 = vmatprep.subr.bf16.mxu0 %v1102_v1  ;;  %v949_v6 = vld [vmem:[%s1383_s3 + $0x8] sm:$0xff]   ;;  %v950_v7 = vld [vmem:[%s1383_s3 + $0x10] sm:$0xff]   ;;  %v1105_v8 = vmov 2  }
  0x58   : > { %935 = vset.pattern.permute.xlu0 %v1103_v2  ;;  %858 = vmatprep.mubr.msk.bf16.mxu0 %vm1104_vm0, %v1102_v1  ;;  %v951_v9 = vld [vmem:[%s1383_s3 + $0x18] sm:$0xff]   ;;  %v1106_v10 = vmov 3   ;;  %vm363_vm1 = vcmask 523264   ;;  %v1107_v12 = vmov 4   ;;  %v1108_v13 = vmov 5   ;;  %s840_s6 = sshll.u32 %s1165_s22, 8 }
  0x59   : > { %s1407_s26 = smov (!%p291_p4, %s808_s26), 3  ;;  %851 = vmatpush3.bf16.msra.mxu0 %v948_v4  ;;  %v1109_v14 = vmov 7   ;;  %v1110_v15 = vmov 6   ;;  %v823_v21 = vld [vmem:[#allocation5 + $0x1] ss:$0 sm:$0xff]  ;;  %s1334_s13 = scalar_lea.hbm %s1385_s5, %s840_s6 }
  0x5a   : > { %s811_s24 = sshll.u32 %s1407_s26, 3  ;;  %s809_s15 = sshll.u32 %s1407_s26, 2  ;;  %852 = vmatprep.subr.bf16.mxu0 %v1102_v1  ;;  %v822_v23 = vld [vmem:[#allocation5] ss:$0 sm:$0xff]  ;;  %v824_v26 = vld [vmem:[#allocation5 + $0x2] ss:$0 sm:$0xff] }
  0x5b   : > { %s300_s7 = scalar_lea.vmem %s1381_s1, %s811_s24  ;;  %s294_s27 = scalar_lea.vmem %s1380_s0, %s809_s15  ;;  %v825_v33 = vld [vmem:[#allocation5 + $0x3] ss:$0 sm:$0xff]  ;;  %v826_v40 = vld [vmem:[#allocation5 + $0x4] ss:$0 sm:$0xff]  ;;  %v827_v46 = vld [vmem:[#allocation5 + $0x5] ss:$0 sm:$0xff] }
  0x5c   : > { %v305_v3 = vld [vmem:[%s300_s7] sm:$0xff]  ;;  %v306_v5 = vld [vmem:[%s300_s7 + $0x8] sm:$0xff]  ;;  %v828_v53 = vld [vmem:[#allocation5 + $0x6] ss:$0 sm:$0xff]  ;;  %s677_s28 = scalar_lea.sflag [#allocation4], %s1283_s23  ;;  %s1111_s22 = smov [#allocation7]  }
  0x5d   : > { %475 = vperm.xlu1 %936, %v305_v3   ;;  %460 = vperm.xlu0 %935, %v305_v3   ;;  %v952_v11 = vld [vmem:[%s294_s27] sm:$0xff]   ;;  %v829_v59 = vld [vmem:[#allocation5 + $0xc] ss:$0 sm:$0xff]  ;;  %s1027_s17 = sshll.u32 %s1111_s22, 4  ;;  %s1028_s17 = int_to_ptr.vmem [resolvable:$false] %s1027_s17 }
  0x5e   : > { %853 = vmatpush3.bf16.msra.mxu0 %v949_v6  ;;  %s1029_s27 = scalar_lea.vmem %s1028_s17, 512 }
  0x5f   : > { %854 = vmatprep.subr.bf16.mxu0 %v1102_v1 }
  0x61   : > { %479 = vperm.xlu1 %936, %v306_v5   ;;  %464 = vperm.xlu0 %935, %v306_v5  }
  0x62   : > { %855 = vmatpush3.bf16.msra.mxu0 %v950_v7 }
  0x63   : > { %856 = vmatprep.subr.bf16.mxu0 %v1102_v1 }
  0x65   : > { %938 = vset.pattern.permute.xlu1 %v1105_v8  ;;  %937 = vset.pattern.permute.xlu0 %v1105_v8  ;;  %v819_v8 = vld [vmem:[#allocation5 + $0x9] ss:$0 sm:$0xff] }
  0x66   : > { %496 = vperm.xlu1 %938, %v306_v5   ;;  %492 = vperm.xlu0 %937, %v305_v3  }
  0x67   : > { %857 = vmatpush3.bf16.msra.mxu0 %v951_v9 }
  0x6a   : > { %939 = vset.pattern.permute.xlu1 %v1106_v10  ;;  %940 = vset.pattern.permute.xlu0 %v1106_v10 }
  0x6b   : > { %509 = vperm.xlu1 %939, %v305_v3   ;;  %513 = vperm.xlu0 %940, %v306_v5  }
  0x6c   : > { %859 = vmatmul.mubr.msk.bf16.vlgmr.msra.gmra.mrb[0].mxu0 %vm363_vm1, %v952_v11 }
  0x6f   : > { %941 = vset.pattern.permute.xlu1 %v1107_v12  ;;  %942 = vset.pattern.permute.xlu0 %v1108_v13 }
  0x70   : > { %526 = vperm.xlu1 %941, %v305_v3   ;;  %543 = vperm.xlu0 %942, %v305_v3  }
  0x74   : > { %530 = vperm.xlu1 %941, %v306_v5   ;;  %945 = vset.pattern.permute.xlu0 %v1109_v14 }
  0x75   : > { %325 = vperm.xlu0 %945, %v306_v5  }
  0x78   : > { %943 = vset.pattern.permute.xlu1 %v1108_v13 }
  0x79   : > { %547 = vperm.xlu1 %943, %v306_v5   ;;  %947 = vset.pattern.permute.xlu0 %v1110_v15 }
  0x7d   : > { %944 = vset.pattern.permute.xlu1 %v1109_v14 }
  0x7e   : > { %320 = vperm.xlu1 %944, %v305_v3  }
  0x82   : > { %946 = vset.pattern.permute.xlu1 %v1110_v15 }
  0x83   : > { %560 = vperm.xlu1 %946, %v305_v3   ;;  %v812_v3 = vld [vmem:[#allocation5 + $0x8] ss:$0 sm:$0xff] }
  0x87   : > { %564 = vperm.xlu1 %946, %v306_v5  }
  0xdc   : > { %v476_v16 = vpop.permute.xlu1 %475  ;;  %v461_v18 = vpop.permute.xlu0 %460 }
  0xdd   : > { %v486_v24 = vmul.f32 %v823_v21, %v476_v16  ;;  %v471_v25 = vmul.f32 %v822_v23, %v461_v18 }
  0xdf   : > { %v488_v30 = vadd.f32 %v486_v24, %v471_v25 }
  0xe0   : > { %v480_v17 = vpop.permute.xlu1 %479  ;;  %v465_v20 = vpop.permute.xlu0 %464 }
  0xe1   : > { %v487_v29 = vmul.f32 %v823_v21, %v480_v17  ;;  %v472_v31 = vmul.f32 %v822_v23, %v465_v20 }
  0xe3   : > { %v489_v38 = vadd.f32 %v487_v29, %v472_v31 }
  0xe5   : > { %v497_v19 = vpop.permute.xlu1 %496  ;;  %v493_v27 = vpop.permute.xlu0 %492 }
  0xe6   : > { %v503_v32 = vmul.f32 %v824_v26, %v493_v27  ;;  %v504_v36 = vmul.f32 %v824_v26, %v497_v19 }
  0xe8   : > { %v505_v39 = vadd.f32 %v503_v32, %v488_v30  ;;  %v506_v44 = vadd.f32 %v504_v36, %v489_v38 }
  0xea   : > { %v510_v22 = vpop.permute.xlu1 %509  ;;  %v514_v35 = vpop.permute.xlu0 %513 }
  0xeb   : > { %v520_v37 = vmul.f32 %v825_v33, %v510_v22  ;;  %v521_v45 = vmul.f32 %v825_v33, %v514_v35 }
  0xed   : > { %v522_v43 = vadd.f32 %v520_v37, %v505_v39  ;;  %v523_v49 = vadd.f32 %v521_v45, %v506_v44 }
  0xef   : > { %v527_v28 = vpop.permute.xlu1 %526  ;;  %v544_v47 = vpop.permute.xlu0 %543 }
  0xf0   : > { %v537_v42 = vmul.f32 %v826_v40, %v527_v28  ;;  %v554_v52 = vmul.f32 %v827_v46, %v544_v47 }
  0xf2   : > { %v539_v51 = vadd.f32 %v537_v42, %v522_v43 }
  0xf3   : > { %v531_v34 = vpop.permute.xlu1 %530 }
  0xf4   : > { %v538_v48 = vmul.f32 %v826_v40, %v531_v34  ;;  %v556_v56 = vadd.f32 %v554_v52, %v539_v51  ;;  %v326_v4 = vpop.permute.xlu0 %325 }
  0xf5   : > { %v333_v6 = vmul.f32 %v812_v3, %v326_v4  ;;  %v821_v4 = vld [vmem:[#allocation5 + $0xb] ss:$0 sm:$0xff] }
  0xf6   : > { %v540_v55 = vadd.f32 %v538_v48, %v523_v49 }
  0xf8   : > { %v548_v41 = vpop.permute.xlu1 %547 }
  0xf9   : > { %v555_v54 = vmul.f32 %v827_v46, %v548_v41 }
  0xfb   : > { %v557_v61 = vadd.f32 %v555_v54, %v540_v55 }
  0xfd   : > { %v321_v50 = vpop.permute.xlu1 %320 }
  0xfe   : > { %v332_v5 = vmul.f32 %v812_v3, %v321_v50 }
 0x102   : > { %v561_v57 = vpop.permute.xlu1 %560 }
 0x103   : > { %v571_v58 = vmul.f32 %v828_v53, %v561_v57  ;;  %v820_v57 = vld [vmem:[#allocation5 + $0xa] ss:$0 sm:$0xff] }
 0x105   : > { %v573_v60 = vadd.f32 %v571_v58, %v556_v56 }
 0x106   : > { %v565_v62 = vpop.permute.xlu1 %564 }
 0x107   : > { %v572_v63 = vmul.f32 %v828_v53, %v565_v62  ;;  %v1316_v0 = vadd.f32 %v829_v59, %v573_v60 }
 0x109   : > { %v574_v1 = vadd.f32 %v572_v63, %v557_v61  ;;  %584 = vadd.xlane.f32.xlu0 %v1316_v0  ;;  %v590_v19 = vmul.f32 %v1316_v0, %v1316_v0  ;;  %v830_v61 = vld [vmem:[#allocation5 + $0xd] ss:$0 sm:$0xff] }
 0x10b   : > { %v1319_v2 = vadd.f32 %v829_v59, %v574_v1 }
 0x10d   : > { %586 = vadd.xlane.f32.xlu0 %v1319_v2  ;;  %v591_v18 = vmul.f32 %v1319_v2, %v1319_v2 }
 0x13f   : > { %v401_v7 = vpop.f32.mrb[0].mxu0 }
 0x140   : > { %v402_v9 = vadd.f32 %v401_v7, %v332_v5  ;;  %v860_v10 = vpop.f32.mrb[1].mxu0  ;;  %v831_v5 = vld [vmem:[#allocation5 + $0xe] ss:$0 sm:$0xff] }
 0x141   : > { %v404_v11 = vpop.f32.mrb[2].mxu0 }
 0x142   : > { %v413_v12 = vadd.f32 %v819_v8, %v402_v9  ;;  %v405_v13 = vadd.f32 %v404_v11, %v333_v6  ;;  %v861_v14 = vpop.f32.mrb[3].mxu0  ;;  %v842_v6 = vld [vmem:[%s1287_s12] sm:$0xff]   ;;  %s807_s12 = sshll.u32 %s1283_s23, 4 }
 0x143   : > { %s289_s7 = scalar_lea.vmem [#allocation7], %s807_s12 }
 0x144   : > { %v414_v15 = vadd.f32 %v819_v8, %v405_v13  ;;  %417 = vadd.xlane.f32.xlu0 %v413_v12  ;;  %v424_v17 = vmul.f32 %v413_v12, %v413_v12  ;;  %s690_s15 = sshll.u32 %s289_s7, 4  ;;  %s1336_s15 = int_to_ptr.vmem [resolvable:$true] %s690_s15 }
 0x145   : > { %s1023_s16 = scalar_lea.vmem %s1336_s15, 256  ;;  %p1030_p13 = scmp.lt.s32.totalorder %s1336_s15, %s1028_s17 }
 0x146   : > { %419 = vadd.xlane.f32.xlu1 %v414_v15  ;;  %v425_v16 = vmul.f32 %v414_v15, %v414_v15  ;;  %p1024_p6 = scmp.ne.s32.totalorder %s1336_s15, %s1023_s16  ;;  %p1031_p3 = scmp.lt.s32.totalorder %s1029_s27, %s1023_s16 }
 0x148   : > { %428 = vadd.xlane.f32.xlu0 %v425_v16  ;;  %v843_v16 = vunpack.c.l.bf16 %v842_v6  ;;  %p1025_p8 = pnand %p1024_p6, %p1235_p12  ;;  %p1032_p7 = por %p1031_p3, %p1030_p13 }
 0x14a   : > { %426 = vadd.xlane.f32.xlu1 %v424_v17  ;;  %p1026_p10 = pneg %p1025_p8 }
 0x14c   : > { %594 = vadd.xlane.f32.xlu0 %v591_v18  ;;  %p1033_p9 = pnand %p1032_p7, %p1026_p10 }
 0x14e   : > { %592 = vadd.xlane.f32.xlu1 %v590_v19 }
 0x196   : > { %v585_v20 = vpop.xlane.xlu0 %584 }
 0x197   : > { %v588_v34 = vmul.f32 0.0078125, %v585_v20 }
 0x199   : > { %v598_v40 = vmul.f32 %v588_v34, %v588_v34  ;;  %v604_v62 = vsub.f32 %v1316_v0, %v588_v34 }
 0x19a   : > { %v587_v21 = vpop.xlane.xlu0 %586 }
 0x19b   : > { %v589_v30 = vmul.f32 0.0078125, %v587_v21 }
 0x19d   : > { %v599_v36 = vmul.f32 %v589_v30, %v589_v30  ;;  %v605_v58 = vsub.f32 %v1319_v2, %v589_v30 }
 0x1d1   : > { %v418_v22 = vpop.xlane.xlu0 %417 }
 0x1d2   : > { %v422_v24 = vmul.f32 0.0078125, %v418_v22 }
 0x1d3   : > { %v420_v23 = vpop.xlane.xlu1 %419 }
 0x1d4   : > { %v423_v25 = vmul.f32 0.0078125, %v420_v23  ;;  %v432_v31 = vmul.f32 %v422_v24, %v422_v24  ;;  %v438_v54 = vsub.f32 %v413_v12, %v422_v24  ;;  %v844_v12 = vunpack.c.h.bf16 %v842_v6 }
 0x1d5   : > { %v429_v26 = vpop.xlane.xlu0 %428 }
 0x1d6   : > { %v433_v27 = vmul.f32 %v423_v25, %v423_v25  ;;  %v431_v28 = vmul.f32 0.0078125, %v429_v26  ;;  %v439_v52 = vsub.f32 %v414_v15, %v423_v25 }
 0x1d7   : > { %v427_v29 = vpop.xlane.xlu1 %426 }
 0x1d8   : > { %v435_v32 = vsub.f32 %v431_v28, %v433_v27  ;;  %v430_v33 = vmul.f32 0.0078125, %v427_v29 }
 0x1d9   : > { %v595_v35 = vpop.xlane.xlu0 %594 }
 0x1da   : > { %v437_v37 = vmax.f32 %v435_v32, 0.0  ;;  %v434_v38 = vsub.f32 %v430_v33, %v432_v31  ;;  %v597_v39 = vmul.f32 0.0078125, %v595_v35 }
 0x1db   : > { %v593_v41 = vpop.xlane.xlu1 %592 }
 0x1dc   : > { %v441_v42 = vadd.f32 1e-12, %v437_v37  ;;  %v436_v43 = vmax.f32 %v434_v38, 0.0  ;;  %v601_v44 = vsub.f32 %v597_v39, %v599_v36  ;;  %v596_v45 = vmul.f32 0.0078125, %v593_v41  ;;  %v832_v39 = vld [vmem:[#allocation5 + $0xf] ss:$0 sm:$0xff] }
 0x1de   : > { %953 = vrsqrt.f32 %v441_v42  ;;  %v440_v46 = vadd.f32 1e-12, %v436_v43  ;;  %v603_v47 = vmax.f32 %v601_v44, 0.0  ;;  %v600_v48 = vsub.f32 %v596_v45, %v598_v40  ;;  %v833_v43 = vld [vmem:[#allocation5 + $0x10] ss:$0 sm:$0xff] }
 0x1e0   : > { %955 = vrsqrt.f32 %v440_v46  ;;  %v607_v49 = vadd.f32 1e-12, %v603_v47  ;;  %v602_v50 = vmax.f32 %v600_v48, 0.0 }
 0x1e2   : > { %957 = vrsqrt.f32 %v607_v49  ;;  %v606_v51 = vadd.f32 1e-12, %v602_v50 }
 0x1e4   : > { %959 = vrsqrt.f32 %v606_v51 }
 0x1e8   : > { %v954_v53 = vpop.eup %953 }
 0x1e9   : > { %v445_v55 = vmul.f32 %v954_v53, %v439_v52 }
 0x1ea   : > { %v956_v56 = vpop.eup %955 }
 0x1eb   : > { %v444_v59 = vmul.f32 %v956_v56, %v438_v54  ;;  %v451_v63 = vmul.f32 %v820_v57, %v445_v55 }
 0x1ec   : > { %v958_v60 = vpop.eup %957 }
 0x1ed   : > { %v611_v1 = vmul.f32 %v958_v60, %v605_v58  ;;  %v450_v8 = vmul.f32 %v820_v57, %v444_v59  ;;  %v457_v10 = vadd.f32 %v821_v4, %v451_v63 }
 0x1ee   : > { %v960_v3 = vpop.eup %959 }
 0x1ef   : > { %v617_v7 = vmul.f32 %v830_v61, %v611_v1  ;;  %v610_v9 = vmul.f32 %v960_v3, %v604_v62  ;;  %v456_v2 = vadd.f32 %v821_v4, %v450_v8 }
 0x1f1   : > { %v623_v11 = vadd.f32 %v831_v5, %v617_v7  ;;  %v616_v13 = vmul.f32 %v830_v61, %v610_v9 }
 0x1f3   : > { %v625_v14 = vadd.f32 %v623_v11, %v457_v10  ;;  %v622_v15 = vadd.f32 %v831_v5, %v616_v13 }
 0x1f5   : > { %v631_v17 = vadd.f32 %v844_v12, %v625_v14  ;;  %v624_v18 = vadd.f32 %v622_v15, %v456_v2 }
 0x1f7   : > { %636 = vadd.xlane.f32.xlu0 %v631_v17  ;;  %v630_v0 = vadd.f32 %v843_v16, %v624_v18  ;;  %v641_v19 = vmul.f32 %v631_v17, %v631_v17 }
 0x1f9   : > { %634 = vadd.xlane.f32.xlu1 %v630_v0  ;;  %v640_v20 = vmul.f32 %v630_v0, %v630_v0 }
 0x1fb   : > { %644 = vadd.xlane.f32.xlu0 %v641_v19 }
 0x1fd   : > { %642 = vadd.xlane.f32.xlu1 %v640_v20 }
 0x284   : > { %v637_v21 = vpop.xlane.xlu0 %636 }
 0x285   : > { %v639_v22 = vmul.f32 0.0078125, %v637_v21 }
 0x286   : > { %v635_v23 = vpop.xlane.xlu1 %634 }
 0x287   : > { %v638_v24 = vmul.f32 0.0078125, %v635_v23  ;;  %v649_v26 = vmul.f32 %v639_v22, %v639_v22  ;;  %v655_v37 = vsub.f32 %v631_v17, %v639_v22 }
 0x288   : > { %v645_v25 = vpop.xlane.xlu0 %644 }
 0x289   : > { %v647_v27 = vmul.f32 0.0078125, %v645_v25  ;;  %v648_v29 = vmul.f32 %v638_v24, %v638_v24  ;;  %v654_v40 = vsub.f32 %v630_v0, %v638_v24 }
 0x28a   : > { %v643_v28 = vpop.xlane.xlu1 %642 }
 0x28b   : > { %v651_v30 = vsub.f32 %v647_v27, %v649_v26  ;;  %v646_v31 = vmul.f32 0.0078125, %v643_v28 }
 0x28d   : > { %v653_v32 = vmax.f32 %v651_v30, 0.0  ;;  %v650_v33 = vsub.f32 %v646_v31, %v648_v29 }
 0x28f   : > { %v657_v34 = vadd.f32 1e-12, %v653_v32  ;;  %v652_v35 = vmax.f32 %v650_v33, 0.0 }
 0x291   : > { %961 = vrsqrt.f32 %v657_v34  ;;  %v656_v36 = vadd.f32 1e-12, %v652_v35 }
 0x293   : > { %963 = vrsqrt.f32 %v656_v36 }
 0x29b   : > { %v962_v38 = vpop.eup %961 }
 0x29c   : > { %v661_v41 = vmul.f32 %v962_v38, %v655_v37 }
 0x29d   : > { %v964_v42 = vpop.eup %963 }
 0x29e   : > { %v667_v44 = vmul.f32 %v832_v39, %v661_v41  ;;  %v660_v45 = vmul.f32 %v964_v42, %v654_v40 }
 0x2a0   : > { %v673_v46 = vadd.f32 %v833_v43, %v667_v44  ;;  %v666_v47 = vmul.f32 %v832_v39, %v660_v45 }
 0x2a2   : > { %v672_v48 = vadd.f32 %v833_v43, %v666_v47  ;;  %675 = vst [vmem:[%s289_s7 + $0x8] sm:$0xff] %v673_v46 }
 0x2a4   : > { %674 = vst [vmem:[%s289_s7] sm:$0xff] %v672_v48 }
 0x2a5   : > { %1036 = shalt.err (!%p1033_p9)
}
 0x2a6   : > { %s1037_s11 = scalar_lea.hbm %s1334_s13, 256  ;;  %s1041_s14 = scalar_lea.hbm %s1385_s5, 512 }
 0x2a7   : > { %p1038_p2 = scmp.ne.s32.totalorder %s1334_s13, %s1037_s11  ;;  %p1042_p11 = scmp.lt.u32.totalorder %s1334_s13, %s1385_s5 }
 0x2a8   : > { %p1043_p1 = scmp.lt.u32.totalorder %s1041_s14, %s1037_s11  ;;  %p1045_p6 = scmp.lt.u32.totalorder %s1037_s11, %s1334_s13 }
 0x2a9   : > { %p1039_p0 = pnand %p1038_p2, %p1235_p12 }
 0x2aa   : > { %p1044_p4 = por %p1043_p1, %p1042_p11 }
 0x2ab   : > { %p1040_p5 = pneg %p1039_p0 }
 0x2ac   : > { %p1046_p8 = por %p1045_p6, %p1044_p4 }
 0x2ae   : > { %p1047_p10 = pnand %p1046_p8, %p1040_p5 }
 0x2b0   : > { %1050 = shalt.err (!%p1047_p10)
}
 0x2b1   : > { %s1112_s7 = smov 128   ;;  %s1113_s10 = smov 8  }
 0x2b2   : > { %868 = dma.vmem_to_hbm [thread:$0]  (%p1235_p12), %s1336_s15, 256, %s1334_s13, %s677_s28, %s1112_s7, %s1112_s7, %s1113_s10  }
 0x2b3 PF: > { %s705_s29 = sand.u32 1, %s1081_s18   ;;  %p1400_p13 = scmp.ne.s32.totalorder %s1390_s25, 0 }
 0x2b4   : > { %p1401_p3 = scmp.ge.s32.totalorder %s1093_s21, 2  ;;  %s706_s16 = scalar_lea.sflag [#allocation4], %s705_s29 }
 0x2b6   : > { %p879_p7 = pnand %p1401_p3, %p1400_p13 }
 0x2b8   : > { %1076 = dma.done.wait (!%p879_p7), %s706_s16, 256  }
 0x2b9   : > { %1078 = vsyncadd (!%p879_p7), %s706_s16, 4294967040  ;;  %p19_p9 = scmp.ge.s32.totalorder %s1200_s30, 4   ;;  %s1402_s18 = smov %s1085_s19 }
 0x2ba   : > { %s1403_s19 = smov %s1089_s20  ;;  %s1404_s20 = smov %s1231_s8 }
 0x2bb   : > { %s1405_s21 = smov %s1200_s30  ;;  %21 = sbr.rel (!%p19_p9) target bundleno = 6 (0x6), region = 95 }
 0x2c2   :  { %711 = vsyncpa [#allocation3], 1 }
 0x2c3   :  { %713 = vsyncpa [#allocation3 + $0x1], 1 }
 0x2c4   :  { %714 = vsyncpa [#allocation6], 1 }
 0x2c5   :  { %715 = vsyncpa [#allocation4], 1 }
 0x2c6   :  { %717 = vsyncpa [#allocation4 + $0x1], 1 }

</bundles_post_ra>
